<compile_context>
chip_gen: v6e
topology: v6e:2x2x1
jax: 0.10.0
libtpu: 0.0.40
codegen_flags: <defaults>
</compile_context>

<pallas_src>
import functools

import jax
import jax.numpy as jnp
from jax.experimental import pallas as pl
from jax.experimental.pallas import tpu as pltpu


def _round_up(a, m):
    return (a + m - 1) // m * m


def _vmem_capacity_bytes():
    try:
        info = pltpu.get_tpu_info()
        return int(getattr(info, "vmem_capacity_bytes", 128 * 1024 * 1024))
    except Exception:
        return 128 * 1024 * 1024


def unideep_fsmn_kernel(x_ref, xprev_ref, xnext_ref,
                        wlin_ref, blin_ref, wproj_ref, conv_ref,
                        o_ref, p1pad_ref,
                        *, lorder, seq_len, pad_sc, matmul_dtype):
    pad = lorder - 1
    ksize = 2 * lorder - 1
    tile_t = x_ref.shape[0]
    halo_block = xprev_ref.shape[0]
    t = pl.program_id(0)

    # resident weights (matmul_dtype for MXU operands, f32 for bias / conv taps)
    wlin = wlin_ref[...]                              # (Din, H)
    blin = blin_ref[...].astype(jnp.float32)          # (1, H)
    wproj = wproj_ref[...]                            # (H, D)

    # ---- main tile: f1 = relu(x @ Wlin + b); p1 = f1 @ Wproj --------------
    x = x_ref[...]                                    # (tile_t, Din)
    f1 = jnp.maximum(
        jnp.dot(x.astype(matmul_dtype), wlin,
                preferred_element_type=jnp.float32) + blin, 0.0)
    p1 = jnp.dot(f1.astype(matmul_dtype), wproj,
                 preferred_element_type=jnp.float32)  # (tile_t, D) f32

    # zero p1 rows that lie past the true sequence length (the reference
    # zero-pads p1 in time); only the last tile can overhang -> static gate.
    if seq_len % tile_t != 0:
        rm = jax.lax.broadcasted_iota(jnp.int32, (tile_t, 1), 0)
        p1 = jnp.where(t * tile_t + rm < seq_len, p1, 0.0)

    # main tile goes into the scratch at a sublane-aligned offset (pad_sc)
    if ksize > 1:
        p1pad_ref[pad_sc:pad_sc + tile_t, :] = p1.astype(p1pad_ref.dtype)

    # ---- halo: recompute p1 for the pad rows just before / after the tile --
    if pad > 0:
        xp = xprev_ref[halo_block - pad:, :]          # last pad rows of prev tile
        xn = xnext_ref[:pad, :]                       # first pad rows of next tile
        xh = jnp.concatenate([xp, xn], axis=0).astype(matmul_dtype)  # (2*pad, Din)
        f1h = jnp.maximum(
            jnp.dot(xh, wlin, preferred_element_type=jnp.float32) + blin, 0.0)
        p1h = jnp.dot(f1h.astype(matmul_dtype), wproj,
                      preferred_element_type=jnp.float32)            # (2*pad, D)

        # global row index of each halo row; zero anything outside [0, seq_len)
        rh = jax.lax.broadcasted_iota(jnp.int32, (2 * pad, 1), 0)
        gh = t * tile_t + jnp.where(rh < pad, rh - pad, tile_t + (rh - pad))
        p1h = jnp.where((gh >= 0) & (gh < seq_len), p1h, 0.0).astype(p1pad_ref.dtype)

        p1pad_ref[pad_sc - pad:pad_sc, :] = p1h[:pad, :]
        p1pad_ref[pad_sc + tile_t:pad_sc + tile_t + pad, :] = p1h[pad:, :]

    # ---- depthwise conv over time: static-slice FMAs on the VPU ------------
    w = conv_ref[...].astype(jnp.float32)             # (ksize, D), read once
    acc = p1 * w[pad:pad + 1, :]                      # center tap from registers
    base = pad_sc - pad
    for k in range(ksize):
        if k == pad:
            continue
        acc = acc + (p1pad_ref[base + k:base + k + tile_t, :]
                     .astype(jnp.float32) * w[k:k + 1, :])

    # ---- residuals: out = input + p1 + conv(p1) ----------------------------
    o_ref[...] = (x.astype(jnp.float32) + p1 + acc).astype(o_ref.dtype)


def unideep_fsmn(x, w_lin, b_lin, w_proj, conv_w, lorder, *,
                 tile_t=None, io_dtype=None, matmul_dtype=jnp.bfloat16):
    """x: (B, T, Din); w_lin: (Din, H); b_lin: (1, H); w_proj: (H, D);
    conv_w: (2*lorder-1, D) with conv_w[k, d] == torch conv1.weight[d, 0, k, 0].

    io_dtype: if set (e.g. jnp.bfloat16), x/out HBM streams use this dtype
    (residual still added in f32 in-kernel).  matmul_dtype: MXU operand dtype
    (f32 accumulation); default bf16 will not bit-match a pure-f32 forward.
    """
    B, T, Din = x.shape
    H = w_lin.shape[1]
    D = w_proj.shape[1]
    ksize = 2 * lorder - 1
    pad = lorder - 1
    assert conv_w.shape == (ksize, D)

    # per-generation defaults: bigger time tiles + more scoped VMEM on 128-MiB
    # parts (v5e/v6e); conservative on v7x (64 MiB physical per TensorCore).
    vmem_cap = _vmem_capacity_bytes()
    if tile_t is None:
        tile_t = 1024 if vmem_cap >= 100 * 1024 * 1024 else 512
    vmem_limit = min((3 * vmem_cap) // 4, 96 * 1024 * 1024)

    # lane-dense feature dims (multiples of 128), sublane-aligned time tiling.
    Din_p = _round_up(Din, 128)
    H_p = _round_up(H, 128)
    D_p = _round_up(D, 128)

    halo_block = _round_up(max(pad, 8), 8)
    tile_t = _round_up(max(8, min(tile_t, T)), halo_block)
    T_p = _round_up(T, tile_t)
    nT = T_p // tile_t
    r = tile_t // halo_block
    n_hblocks = T_p // halo_block
    pad_sc = _round_up(pad, 16) if pad > 0 else 0   # aligned main-tile store

    # bf16 scratch halves conv-phase vector-load bytes for large kernels.
    scratch_dtype = jnp.bfloat16 if ksize >= 9 else jnp.float32

    # Optional bf16 I/O: biggest lever for the HBM-bound regime on v6e/v7x.
    if io_dtype is not None and x.dtype != io_dtype:
        x = x.astype(io_dtype)

    # Avoid an extra full HBM pass over the activations when already aligned.
    if (T_p != T) or (Din_p != Din):
        xq = jnp.pad(x, ((0, 0), (0, T_p - T), (0, Din_p - Din)))
    else:
        xq = x

    # zero-pad small operands; padded rows/cols contribute exactly zero.
    wl = jnp.pad(w_lin, ((0, Din_p - Din), (0, H_p - H))).astype(matmul_dtype)
    bl = jnp.pad(b_lin, ((0, 0), (0, H_p - H))).astype(jnp.float32)
    wp = jnp.pad(w_proj, ((0, H_p - H), (0, D_p - D))).astype(matmul_dtype)
    cw = jnp.pad(conv_w, ((0, 0), (0, D_p - D))).astype(jnp.float32)

    itemsize = jnp.dtype(xq.dtype).itemsize
    flops = (2 * B * (T_p + nT * 2 * pad) * (Din_p * H_p + H_p * D_p)
             + 2 * B * T_p * D_p * (ksize + 1))
    bytes_accessed = (B * T_p * Din_p * itemsize          # x
                      + B * T_p * D_p * itemsize          # out
                      + wl.size * wl.dtype.itemsize + wp.size * wp.dtype.itemsize
                      + bl.size * 4 + cw.size * 4)
    cost = pl.CostEstimate(flops=int(flops), transcendentals=0,
                           bytes_accessed=int(bytes_accessed))

    kern = functools.partial(unideep_fsmn_kernel, lorder=lorder, seq_len=T,
                             pad_sc=pad_sc, matmul_dtype=matmul_dtype)

    out = pl.pallas_call(
        kern,
        out_shape=jax.ShapeDtypeStruct((B, T_p, D_p), xq.dtype),
        grid_spec=pltpu.PrefetchScalarGridSpec(
            num_scalar_prefetch=0,
            grid=(nT, B),                 # time tiles leading -> v7x megacore
            in_specs=[
                # main x tile
                pl.BlockSpec((pl.Squeezed(), tile_t, Din_p),
                             lambda t, b: (b, t, 0)),
                # prev-neighbour halo rows (clamped at t==0, masked in-kernel)
                pl.BlockSpec((pl.Squeezed(), halo_block, Din_p),
                             lambda t, b: (b, jnp.maximum(t * r - 1, 0), 0)),
                # next-neighbour halo rows (clamped at last tile, masked)
                pl.BlockSpec((pl.Squeezed(), halo_block, Din_p),
                             lambda t, b: (b, jnp.minimum((t + 1) * r,
                                                          n_hblocks - 1), 0)),
                # weights (constant index -> resident; small at test shapes)
                pl.BlockSpec((Din_p, H_p), lambda t, b: (0, 0)),
                pl.BlockSpec((1, H_p), lambda t, b: (0, 0)),
                pl.BlockSpec((H_p, D_p), lambda t, b: (0, 0)),
                pl.BlockSpec((ksize, D_p), lambda t, b: (0, 0)),
            ],
            out_specs=pl.BlockSpec((pl.Squeezed(), tile_t, D_p),
                                   lambda t, b: (b, t, 0)),
            scratch_shapes=[pltpu.VMEM((pad_sc + tile_t + pad, D_p),
                                       scratch_dtype)],
        ),
        compiler_params=pltpu.CompilerParams(
            dimension_semantics=("parallel", "parallel"),
            vmem_limit_bytes=int(vmem_limit)),
        cost_estimate=cost,
    )(xq, xq, xq, wl, bl, wp, cw)

    if (T_p != T) or (D_p != D):
        out = out[:, :T, :D]
    return out


def ref_forward(x, w_lin, b_lin, w_proj, conv_w, lorder, matmul_dtype=jnp.float32):
    """Pure-JAX reference matching the PyTorch forward semantics.
    matmul_dtype=bfloat16 emulates the kernel's bf16-operand / f32-accum MXU path."""
    f1 = jax.nn.relu(
        jnp.dot(x.astype(matmul_dtype), w_lin.astype(matmul_dtype),
                preferred_element_type=jnp.float32) + b_lin.astype(jnp.float32))
    p1 = jnp.dot(f1.astype(matmul_dtype), w_proj.astype(matmul_dtype),
                 preferred_element_type=jnp.float32)
    B, T, D = p1.shape
    pad = lorder - 1
    p1p = jnp.pad(p1, ((0, 0), (pad, pad), (0, 0)))
    conv = jnp.zeros_like(p1)
    for k in range(2 * lorder - 1):
        conv = conv + p1p[:, k:k + T, :] * conv_w[k][None, None, :]
    return (x.astype(jnp.float32) + p1 + conv).astype(x.dtype)


def _make_params(key, input_dim, hidden_size, output_dim, lorder):
    k1, k2, k3, k4 = jax.random.split(key, 4)
    ksize = 2 * lorder - 1
    # nn.Linear(input_dim, hidden_size): stored transposed as (Din, H)
    w_lin = jax.random.normal(k1, (input_dim, hidden_size), jnp.float32) * 0.1
    b_lin = jax.random.normal(k2, (1, hidden_size), jnp.float32) * 0.1
    # nn.Linear(hidden_size, output_dim, bias=False): stored as (H, Dout)
    w_proj = jax.random.normal(k3, (hidden_size, output_dim), jnp.float32) * 0.1
    # nn.Conv2d(D, D, [ksize, 1], groups=D, bias=False): (D,1,ksize,1)->(ksize,D)
    conv_w = jax.random.normal(k4, (ksize, output_dim), jnp.float32) * 0.1
    return w_lin, b_lin, w_proj, conv_w


if __name__ == "__main__":
    key = jax.random.PRNGKey(0)

    # Test 1: lane-aligned shapes, single time tile, f32 I/O (no pad/slice copies).
    B, T, dim, hidden, lorder = 2, 128, 128, 128, 3
    kx, kp, key = jax.random.split(key, 3)
    x = jax.random.normal(kx, (B, T, dim), dtype=jnp.float32)
    w_lin, b_lin, w_proj, conv_w = _make_params(kp, dim, hidden, dim, lorder)
    out = jax.block_until_ready(unideep_fsmn(x, w_lin, b_lin, w_proj, conv_w, lorder))
    ref = ref_forward(x, w_lin, b_lin, w_proj, conv_w, lorder,
                      matmul_dtype=jnp.bfloat16)
    assert out.shape == (B, T, dim)
    assert bool(jnp.allclose(out, ref, atol=2e-3, rtol=2e-3)), "test1 mismatch"

    # Test 2: unaligned D/H/T, multiple time tiles (exercises halo + masking).
    B, T, dim, hidden, lorder = 2, 100, 48, 64, 4
    kx, kp, key = jax.random.split(key, 3)
    x = jax.random.normal(kx, (B, T, dim), dtype=jnp.float32)
    w_lin, b_lin, w_proj, conv_w = _make_params(kp, dim, hidden, dim, lorder)
    out = jax.block_until_ready(
        unideep_fsmn(x, w_lin, b_lin, w_proj, conv_w, lorder, tile_t=64))
    ref = ref_forward(x, w_lin, b_lin, w_proj, conv_w, lorder,
                      matmul_dtype=jnp.bfloat16)
    assert out.shape == (B, T, dim)
    assert bool(jnp.allclose(out, ref, atol=2e-3, rtol=2e-3)), "test2 mismatch"

    # Test 3: bf16 HBM I/O + large lorder (ksize>=9 -> bf16 conv scratch path).
    B, T, dim, hidden, lorder = 2, 96, 64, 64, 6
    kx, kp, key = jax.random.split(key, 3)
    x = jax.random.normal(kx, (B, T, dim), dtype=jnp.float32)
    w_lin, b_lin, w_proj, conv_w = _make_params(kp, dim, hidden, dim, lorder)
    out = jax.block_until_ready(
        unideep_fsmn(x, w_lin, b_lin, w_proj, conv_w, lorder,
                     tile_t=32, io_dtype=jnp.bfloat16))
    x_bf = x.astype(jnp.bfloat16)
    ref = ref_forward(x_bf, w_lin, b_lin, w_proj, conv_w, lorder,
                      matmul_dtype=jnp.bfloat16)
    assert out.shape == (B, T, dim)
    assert out.dtype == jnp.bfloat16
    assert bool(jnp.allclose(out.astype(jnp.float32), ref.astype(jnp.float32),
                             atol=5e-2, rtol=5e-2)), "test3 mismatch"

    print("KERNEL_OK")
</pallas_src>

<mosaic_0001>
module attributes {stable_mosaic.version = 11 : i64} {
  func.func @unideep_fsmn_kernel(%arg0: i32, %arg1: i32, %arg2: memref<1x128x128xf32, #tpu.memory_space<vmem>>, %arg3: memref<1x8x128xf32, #tpu.memory_space<vmem>>, %arg4: memref<1x8x128xf32, #tpu.memory_space<vmem>>, %arg5: memref<128x128xbf16, #tpu.memory_space<vmem>>, %arg6: memref<1x128xf32, #tpu.memory_space<vmem>>, %arg7: memref<128x128xbf16, #tpu.memory_space<vmem>>, %arg8: memref<5x128xf32, #tpu.memory_space<vmem>>, %arg9: memref<1x128x128xf32, #tpu.memory_space<vmem>>, %arg10: memref<146x128xf32, #tpu.memory_space<vmem>>) attributes {dimension_semantics = [#tpu.dimension_semantics<parallel>, #tpu.dimension_semantics<parallel>], iteration_bounds = array<i64: 1, 2>, scalar_prefetch = 0 : i64, scratch_operands = 1 : i64, tpu.core_type = #tpu.core_type<tc>, window_params = [{transform_indices = @transform_0, window_bounds = array<i64: 1, 128, 128>}, {transform_indices = @transform_1, window_bounds = array<i64: 1, 8, 128>}, {transform_indices = @transform_2, window_bounds = array<i64: 1, 8, 128>}, {pipeline_mode = #tpu.pipeline_mode<synchronous>, transform_indices = @transform_3, window_bounds = array<i64: 128, 128>}, {pipeline_mode = #tpu.pipeline_mode<synchronous>, transform_indices = @transform_4, window_bounds = array<i64: 1, 128>}, {pipeline_mode = #tpu.pipeline_mode<synchronous>, transform_indices = @transform_5, window_bounds = array<i64: 128, 128>}, {pipeline_mode = #tpu.pipeline_mode<synchronous>, transform_indices = @transform_6, window_bounds = array<i64: 5, 128>}, {transform_indices = @transform_7, window_bounds = array<i64: 1, 128, 128>}]} {
    %c0 = arith.constant 0 : index
    %c0_0 = arith.constant 0 : index
    %0 = vector.load %arg5[%c0, %c0_0] : memref<128x128xbf16, #tpu.memory_space<vmem>>, vector<128x128xbf16>
    %c0_1 = arith.constant 0 : index
    %c0_2 = arith.constant 0 : index
    %1 = vector.load %arg6[%c0_1, %c0_2] : memref<1x128xf32, #tpu.memory_space<vmem>>, vector<1x128xf32>
    %c0_3 = arith.constant 0 : index
    %c0_4 = arith.constant 0 : index
    %2 = vector.load %arg7[%c0_3, %c0_4] : memref<128x128xbf16, #tpu.memory_space<vmem>>, vector<128x128xbf16>
    %c0_5 = arith.constant 0 : index
    %c0_6 = arith.constant 0 : index
    %c0_7 = arith.constant 0 : index
    %3 = vector.load %arg2[%c0_5, %c0_6, %c0_7] : memref<1x128x128xf32, #tpu.memory_space<vmem>>, vector<1x128x128xf32>
    %4 = vector.shape_cast %3 : vector<1x128x128xf32> to vector<128x128xf32>
    %5 = arith.truncf %4 : vector<128x128xf32> to vector<128x128xbf16>
    %cst = arith.constant dense<0.000000e+00> : vector<128x128xf32>
    %6 = tpu.matmul %5, %0, %cst {dimension_numbers = #tpu.dot_dimension_numbers<[1], [0], [0], [1], [0, 0, 1, 1], [], []>} : vector<128x128xbf16>, vector<128x128xbf16>, vector<128x128xf32> -> vector<128x128xf32>
    %7 = vector.broadcast %1 : vector<1x128xf32> to vector<128x128xf32>
    %8 = arith.addf %6, %7 : vector<128x128xf32>
    %cst_8 = arith.constant 0.000000e+00 : f32
    %9 = vector.broadcast %cst_8 : f32 to vector<128x128xf32>
    %10 = arith.maximumf %8, %9 : vector<128x128xf32>
    %11 = arith.truncf %10 : vector<128x128xf32> to vector<128x128xbf16>
    %cst_9 = arith.constant dense<0.000000e+00> : vector<128x128xf32>
    %12 = tpu.matmul %11, %2, %cst_9 {dimension_numbers = #tpu.dot_dimension_numbers<[1], [0], [0], [1], [0, 0, 1, 1], [], []>} : vector<128x128xbf16>, vector<128x128xbf16>, vector<128x128xf32> -> vector<128x128xf32>
    %c16 = arith.constant 16 : index
    %c0_10 = arith.constant 0 : index
    %13 = vector.load %arg10[%c16, %c0_10] : memref<146x128xf32, #tpu.memory_space<vmem>>, vector<128x128xf32>
    tpu.vector_store %arg10[%c16, %c0_10], %12 {strides = array<i32>} : memref<146x128xf32, #tpu.memory_space<vmem>>, vector<128x128xf32>,
    %c0_11 = arith.constant 0 : index
    %c6 = arith.constant 6 : index
    %c0_12 = arith.constant 0 : index
    %14 = vector.load %arg3[%c0_11, %c6, %c0_12] : memref<1x8x128xf32, #tpu.memory_space<vmem>>, vector<1x2x128xf32>
    %15 = vector.shape_cast %14 : vector<1x2x128xf32> to vector<2x128xf32>
    %c0_13 = arith.constant 0 : index
    %c0_14 = arith.constant 0 : index
    %c0_15 = arith.constant 0 : index
    %16 = vector.load %arg4[%c0_13, %c0_14, %c0_15] : memref<1x8x128xf32, #tpu.memory_space<vmem>>, vector<1x2x128xf32>
    %17 = vector.shape_cast %16 : vector<1x2x128xf32> to vector<2x128xf32>
    %18 = tpu.concatenate %15, %17 in 0 : vector<2x128xf32>, vector<2x128xf32> -> vector<4x128xf32>
    %19 = arith.truncf %18 : vector<4x128xf32> to vector<4x128xbf16>
    %cst_16 = arith.constant dense<0.000000e+00> : vector<4x128xf32>
    %20 = tpu.matmul %19, %0, %cst_16 {dimension_numbers = #tpu.dot_dimension_numbers<[1], [0], [0], [1], [0, 0, 1, 1], [], []>} : vector<4x128xbf16>, vector<128x128xbf16>, vector<4x128xf32> -> vector<4x128xf32>
    %21 = vector.broadcast %1 : vector<1x128xf32> to vector<4x128xf32>
    %22 = arith.addf %20, %21 : vector<4x128xf32>
    %cst_17 = arith.constant 0.000000e+00 : f32
    %23 = vector.broadcast %cst_17 : f32 to vector<4x128xf32>
    %24 = arith.maximumf %22, %23 : vector<4x128xf32>
    %25 = arith.truncf %24 : vector<4x128xf32> to vector<4x128xbf16>
    %cst_18 = arith.constant dense<0.000000e+00> : vector<4x128xf32>
    %26 = tpu.matmul %25, %2, %cst_18 {dimension_numbers = #tpu.dot_dimension_numbers<[1], [0], [0], [1], [0, 0, 1, 1], [], []>} : vector<4x128xbf16>, vector<128x128xbf16>, vector<4x128xf32> -> vector<4x128xf32>
    %27 = tpu.iota {dimensions = array<i32: 0>} : vector<4x1xi32>
    %c128_i32 = arith.constant 128 : i32
    %28 = arith.muli %arg0, %c128_i32 : i32
    %c2_i32 = arith.constant 2 : i32
    %29 = vector.broadcast %c2_i32 : i32 to vector<4x1xi32>
    %30 = arith.cmpi slt, %27, %29 : vector<4x1xi32>
    %c2_i32_19 = arith.constant 2 : i32
    %31 = vector.broadcast %c2_i32_19 : i32 to vector<4x1xi32>
    %32 = arith.subi %27, %31 : vector<4x1xi32>
    %c2_i32_20 = arith.constant 2 : i32
    %33 = vector.broadcast %c2_i32_20 : i32 to vector<4x1xi32>
    %34 = arith.subi %27, %33 : vector<4x1xi32>
    %c128_i32_21 = arith.constant 128 : i32
    %35 = vector.broadcast %c128_i32_21 : i32 to vector<4x1xi32>
    %36 = arith.addi %35, %34 : vector<4x1xi32>
    %37 = arith.select %30, %32, %36 : vector<4x1xi1>, vector<4x1xi32>
    %38 = vector.broadcast %28 : i32 to vector<4x1xi32>
    %39 = arith.addi %38, %37 : vector<4x1xi32>
    %c0_i32 = arith.constant 0 : i32
    %40 = vector.broadcast %c0_i32 : i32 to vector<4x1xi32>
    %41 = arith.cmpi sge, %39, %40 : vector<4x1xi32>
    %c128_i32_22 = arith.constant 128 : i32
    %42 = vector.broadcast %c128_i32_22 : i32 to vector<4x1xi32>
    %43 = arith.cmpi slt, %39, %42 : vector<4x1xi32>
    %44 = arith.andi %41, %43 : vector<4x1xi1>
    %cst_23 = arith.constant 0.000000e+00 : f32
    %45 = vector.shape_cast %44 : vector<4x1xi1> to vector<4x1xi1>
    %46 = vector.broadcast %45 : vector<4x1xi1> to vector<4x128xi1>
    %47 = vector.broadcast %cst_23 : f32 to vector<4x128xf32>
    %48 = arith.select %46, %26, %47 : vector<4x128xi1>, vector<4x128xf32>
    %49 = vector.extract_strided_slice %48 {offsets = [0, 0], sizes = [2, 128], strides = [1, 1]} : vector<4x128xf32> to vector<2x128xf32>
    %c14 = arith.constant 14 : index
    %c0_24 = arith.constant 0 : index
    %50 = vector.load %arg10[%c14, %c0_24] : memref<146x128xf32, #tpu.memory_space<vmem>>, vector<2x128xf32>
    tpu.vector_store %arg10[%c14, %c0_24], %49 {strides = array<i32>} : memref<146x128xf32, #tpu.memory_space<vmem>>, vector<2x128xf32>,
    %51 = vector.extract_strided_slice %48 {offsets = [2, 0], sizes = [2, 128], strides = [1, 1]} : vector<4x128xf32> to vector<2x128xf32>
    %c144 = arith.constant 144 : index
    %c0_25 = arith.constant 0 : index
    %52 = vector.load %arg10[%c144, %c0_25] : memref<146x128xf32, #tpu.memory_space<vmem>>, vector<2x128xf32>
    tpu.vector_store %arg10[%c144, %c0_25], %51 {strides = array<i32>} : memref<146x128xf32, #tpu.memory_space<vmem>>, vector<2x128xf32>,
    %c0_26 = arith.constant 0 : index
    %c0_27 = arith.constant 0 : index
    %53 = vector.load %arg8[%c0_26, %c0_27] : memref<5x128xf32, #tpu.memory_space<vmem>>, vector<5x128xf32>
    %54 = vector.extract_strided_slice %53 {offsets = [2, 0], sizes = [1, 128], strides = [1, 1]} : vector<5x128xf32> to vector<1x128xf32>
    %55 = vector.broadcast %54 : vector<1x128xf32> to vector<128x128xf32>
    %56 = arith.mulf %12, %55 : vector<128x128xf32>
    %c14_28 = arith.constant 14 : index
    %c0_29 = arith.constant 0 : index
    %57 = vector.load %arg10[%c14_28, %c0_29] : memref<146x128xf32, #tpu.memory_space<vmem>>, vector<128x128xf32>
    %58 = vector.extract_strided_slice %53 {offsets = [0, 0], sizes = [1, 128], strides = [1, 1]} : vector<5x128xf32> to vector<1x128xf32>
    %59 = vector.broadcast %58 : vector<1x128xf32> to vector<128x128xf32>
    %60 = arith.mulf %57, %59 : vector<128x128xf32>
    %61 = arith.addf %56, %60 : vector<128x128xf32>
    %c15 = arith.constant 15 : index
    %c0_30 = arith.constant 0 : index
    %62 = vector.load %arg10[%c15, %c0_30] : memref<146x128xf32, #tpu.memory_space<vmem>>, vector<128x128xf32>
    %63 = vector.extract_strided_slice %53 {offsets = [1, 0], sizes = [1, 128], strides = [1, 1]} : vector<5x128xf32> to vector<1x128xf32>
    %64 = vector.broadcast %63 : vector<1x128xf32> to vector<128x128xf32>
    %65 = arith.mulf %62, %64 : vector<128x128xf32>
    %66 = arith.addf %61, %65 : vector<128x128xf32>
    %c17 = arith.constant 17 : index
    %c0_31 = arith.constant 0 : index
    %67 = vector.load %arg10[%c17, %c0_31] : memref<146x128xf32, #tpu.memory_space<vmem>>, vector<128x128xf32>
    %68 = vector.extract_strided_slice %53 {offsets = [3, 0], sizes = [1, 128], strides = [1, 1]} : vector<5x128xf32> to vector<1x128xf32>
    %69 = vector.broadcast %68 : vector<1x128xf32> to vector<128x128xf32>
    %70 = arith.mulf %67, %69 : vector<128x128xf32>
    %71 = arith.addf %66, %70 : vector<128x128xf32>
    %c18 = arith.constant 18 : index
    %c0_32 = arith.constant 0 : index
    %72 = vector.load %arg10[%c18, %c0_32] : memref<146x128xf32, #tpu.memory_space<vmem>>, vector<128x128xf32>
    %73 = vector.extract_strided_slice %53 {offsets = [4, 0], sizes = [1, 128], strides = [1, 1]} : vector<5x128xf32> to vector<1x128xf32>
    %74 = vector.broadcast %73 : vector<1x128xf32> to vector<128x128xf32>
    %75 = arith.mulf %72, %74 : vector<128x128xf32>
    %76 = arith.addf %71, %75 : vector<128x128xf32>
    %77 = arith.addf %4, %12 : vector<128x128xf32>
    %78 = arith.addf %77, %76 : vector<128x128xf32>
    %c0_33 = arith.constant 0 : index
    %c0_34 = arith.constant 0 : index
    %c0_35 = arith.constant 0 : index
    %79 = vector.load %arg9[%c0_33, %c0_34, %c0_35] : memref<1x128x128xf32, #tpu.memory_space<vmem>>, vector<1x128x128xf32>
    %80 = vector.shape_cast %79 : vector<1x128x128xf32> to vector<128x128xf32>
    %81 = vector.shape_cast %78 : vector<128x128xf32> to vector<1x128x128xf32>
    tpu.vector_store %arg9[%c0_33, %c0_34, %c0_35], %81 {strides = array<i32>} : memref<1x128x128xf32, #tpu.memory_space<vmem>>, vector<1x128x128xf32>,
    return
  }
  func.func @transform_0(%arg0: i32, %arg1: i32) -> (i32, i32, i32) {
    %c0_i32 = arith.constant 0 : i32
    %c0_i32_0 = arith.constant 0 : i32
    return %arg1, %arg0, %c0_i32 : i32, i32, i32
  }
  func.func @transform_1(%arg0: i32, %arg1: i32) -> (i32, i32, i32) {
    %c16_i32 = arith.constant 16 : i32
    %0 = arith.muli %arg0, %c16_i32 : i32
    %c1_i32 = arith.constant 1 : i32
    %1 = arith.subi %0, %c1_i32 : i32
    %c0_i32 = arith.constant 0 : i32
    %2 = arith.maxsi %1, %c0_i32 : i32
    %c0_i32_0 = arith.constant 0 : i32
    %c0_i32_1 = arith.constant 0 : i32
    return %arg1, %2, %c0_i32_0 : i32, i32, i32
  }
  func.func @transform_2(%arg0: i32, %arg1: i32) -> (i32, i32, i32) {
    %c1_i32 = arith.constant 1 : i32
    %0 = arith.addi %arg0, %c1_i32 : i32
    %c16_i32 = arith.constant 16 : i32
    %1 = arith.muli %0, %c16_i32 : i32
    %c15_i32 = arith.constant 15 : i32
    %2 = arith.minsi %1, %c15_i32 : i32
    %c0_i32 = arith.constant 0 : i32
    %c0_i32_0 = arith.constant 0 : i32
    return %arg1, %2, %c0_i32 : i32, i32, i32
  }
  func.func @transform_3(%arg0: i32, %arg1: i32) -> (i32, i32) {
    %c0_i32 = arith.constant 0 : i32
    %c0_i32_0 = arith.constant 0 : i32
    %c0_i32_1 = arith.constant 0 : i32
    return %c0_i32, %c0_i32_0 : i32, i32
  }
  func.func @transform_4(%arg0: i32, %arg1: i32) -> (i32, i32) {
    %c0_i32 = arith.constant 0 : i32
    %c0_i32_0 = arith.constant 0 : i32
    %c0_i32_1 = arith.constant 0 : i32
    return %c0_i32, %c0_i32_0 : i32, i32
  }
  func.func @transform_5(%arg0: i32, %arg1: i32) -> (i32, i32) {
    %c0_i32 = arith.constant 0 : i32
    %c0_i32_0 = arith.constant 0 : i32
    %c0_i32_1 = arith.constant 0 : i32
    return %c0_i32, %c0_i32_0 : i32, i32
  }
  func.func @transform_6(%arg0: i32, %arg1: i32) -> (i32, i32) {
    %c0_i32 = arith.constant 0 : i32
    %c0_i32_0 = arith.constant 0 : i32
    %c0_i32_1 = arith.constant 0 : i32
    return %c0_i32, %c0_i32_0 : i32, i32
  }
  func.func @transform_7(%arg0: i32, %arg1: i32) -> (i32, i32, i32) {
    %c0_i32 = arith.constant 0 : i32
    %c0_i32_0 = arith.constant 0 : i32
    return %arg1, %arg0, %c0_i32 : i32, i32, i32
  }
}

</mosaic_0001>

<bundles_post_ra>
// kernel: tpu_custom_call.1
= control target key start
LH: loop header
LB: loop body
LE: loop exit
PB: predicated region body
PF: predicated region fallthrough
CT: control target
= control target key end

     0   :  { %s2632_s0 = inlined_call_operand.hbm [shape: f32[2,128,128], index: 0, kind: input, shape index: {}]   ;;  %s2633_s1 = inlined_call_operand.hbm [shape: f32[2,128,128], index: 1, kind: input, shape index: {}]   ;;  %s2634_s2 = inlined_call_operand.hbm [shape: f32[2,128,128], index: 2, kind: input, shape index: {}]   ;;  %s2635_s3 = inlined_call_operand.hbm [shape: bf16[128,128], index: 3, kind: input, shape index: {}]   ;;  %s2636_s4 = inlined_call_operand.vmem [shape: f32[1,128], index: 4, kind: input, shape index: {}]   ;;  %s2637_s5 = inlined_call_operand.hbm [shape: bf16[128,128], index: 5, kind: input, shape index: {}]   ;;  %s2638_s6 = inlined_call_operand.vmem [shape: f32[5,128], index: 6, kind: input, shape index: {}]   ;;  %s2639_s7 = inlined_call_operand.hbm [shape: f32[2,128,128], index: 7, kind: output, shape index: {}]  }
   0x1   :  { %2655 = sst [smem:[#allocation24_spill]] %s2633_s1 }
   0x2   :  { %2656 = sst [smem:[#allocation25_spill]] %s2635_s3 }
   0x3   :  { %2657 = sst [smem:[#allocation26_spill]] %s2637_s5 }
   0x4   :  { %2658 = sst [smem:[#allocation27_spill]] %s2639_s7 }
   0x5   :  { %12 = vsyncpa [#allocation4], 0 }
   0x6   :  { %14 = vsyncpa [#allocation4 + $0x1], 0 }
   0x7   :  { %15 = vsyncpa [#allocation7], 0 }
   0x8   :  { %17 = vsyncpa [#allocation7 + $0x1], 0 }
   0x9   :  { %18 = vsyncpa [#allocation10], 0 }
   0xa   :  { %19 = vsyncpa [#allocation5], 0 }
   0xb   :  { %21 = vsyncpa [#allocation5 + $0x1], 0  ;;  %s2007_s24 = smov 0   ;;  %s2009_s25 = smov 0  }
   0xc   :  { %s2011_s26 = smov 0   ;;  %s2013_s27 = smov 0  }
   0xd   :  { %s2015_s28 = smov 0   ;;  %s2017_s29 = smov 0  }
   0xe LB: > { %2659 = sst [smem:[#allocation17_spill]] %s1931_s24  ;;  %s2038_s30 = sadd.s32 4294967295, %s1951_s29   ;;  %s1951_s29 = sphi %s2017_s29, %s27_s29   ;;  %s1947_s28 = sphi %s2015_s28, %s2697_s28   ;;  %s1943_s27 = sphi %s2013_s27, %s2696_s27   ;;  %s1939_s26 = sphi %s2011_s26, %s2695_s26   ;;  %s1935_s25 = sphi %s2009_s25, %s2699_s25   ;;  %s1931_s24 = sphi %s2007_s24, %s2698_s24  }
   0xf   : > { %2660 = sst [smem:[#allocation18_spill]] %s1939_s26  ;;  %s1405_s8 = sadd.s32 4294967294, %s1951_s29  }
  0x10   : > { %2661 = sst [smem:[#allocation19_spill]] %s1947_s28  ;;  %p61_p0 = scmp.ne.s32.totalorder %s1935_s25, %s1931_s24 }
  0x11   : > { %2662 = sst [smem:[#allocation20_spill]] %s1951_s29  ;;  %p2647_p1 = scmp.eq.s32.totalorder %s2038_s30, 0 }
  0x12   : > { %p249_p3 = scmp.eq.s32.totalorder %s1405_s8, 1  ;;  %p1406_p5 = scmp.ge.s32.totalorder %s1951_s29, 1 }
  0x13   : > { %p2047_p4 = por %p2647_p1, %p61_p0  ;;  %p256_p7 = scmp.lt.s32.totalorder %s1951_s29, 3 }
  0x14   : > { %p2052_p6 = por %p249_p3, %p61_p0  ;;  %s1953_s12 = smov [#allocation9]  }
  0x15   : > { %p2057_p8 = pnand %p1406_p5, %p256_p7  ;;  %s268_s13 = sshll.u32 %s1953_s12, 4  ;;  %s269_s13 = int_to_ptr.vmem [resolvable:$true] %s268_s13 }
  0x16   : > { %s2664_s10 = scalar_select %p2052_p6, 1, 0 }
  0x17   : > { %p1625_p9 = pneg %p2057_p8  ;;  %s36_s15 = sadd.s32 1, %s1947_s28 }
  0x18   : > { %2665 = sst [smem:[#allocation21_spill]] %s2664_s10  ;;  %s1738_s16 = scalar_lea.vmem %s269_s13, 1024 }
  0x19   : > { %p2066_p11 = pnand %p1625_p9, %p2647_p1  ;;  %p1739_p13 = scmp.ne.s32.totalorder %s269_s13, %s1738_s16 }
  0x1a   : > { %p1746_p5 = scmp.lt.s32.totalorder %s269_s13, %s269_s13  ;;  %p1747_p7 = scmp.lt.s32.totalorder %s1738_s16, %s1738_s16 }
  0x1b   : > { %p2648_p12 = pneg %p2066_p11 }
  0x1c   : > { %p1748_p2 = por %p1747_p7, %p1746_p5 }
  0x1d   : > { %p1741_p0 = pnand %p1739_p13, %p2648_p12 }
  0x1f   : > { %p1742_p3 = pneg %p1741_p0 }
  0x21   : > { %p1749_p10 = pnand %p1748_p2, %p1742_p3 }
  0x23   : > { %1752 = shalt.err (!%p1749_p10)
}
  0x24   : > { %s2640_s17 = smov 64   ;;  %s2641_s18 = smov 4  }
  0x25   : > { %s2668_s3 = sld [smem:[#allocation25_spill]]  ;;  %p37_p2 = scmp.ge.s32.totalorder %s36_s15, 2 }
  0x26   : > { %s48_s21 = sadd.s32 1, %s1939_s26  ;;  %p55_p9 = scmp.ne.s32.totalorder %s1939_s26, %s1935_s25 }
  0x27   : > { %p56_p10 = scmp.eq.s32.totalorder %s1951_s29, 0  ;;  %s2701_s15 = smov (%p37_p2, %s36_s15), 0 }
  0x28   : > { %2669 = sst [smem:[#allocation22_spill]] %s2701_s15  ;;  %p2670_p0 = scmp.eq.s32.totalorder %s2038_s30, 1 }
  0x29   : > { %p57_p13 = por %p56_p10, %p55_p9  ;;  %s43_s23 = ssub.s32 %s1947_s28, %s2701_s15 }
  0x2a   : > { %p2092_p3 = por %p2670_p0, %p55_p9  ;;  %p1648_p5 = scmp.lt.s32.totalorder %s1951_s29, 2 }
  0x2b   : > { %1628 = dma.hbm_to_vmem [thread:$0]  (!%p2066_p11), %s2668_s3, 1024, %s269_s13, [#allocation10], %s2640_s17, %s2640_s17, %s2641_s18  }
  0x2c   : > { %s2671_s22 = scalar_select %p2092_p3, 1, 0 }
  0x2d   : > { %p46_p7 = scmp.eq.s32.totalorder %s43_s23, 0  ;;  %s2100_s8 = sand.u32 1, %s1939_s26  }
  0x2e   : > { %s2103_s12 = sshll.u32 %s1947_s28, 11  ;;  %p2105_p2 = pnand %p1648_p5, %p57_p13 }
  0x2f   : > { %s2110_s16 = scalar_select %p46_p7, %s1939_s26, %s48_s21  }
  0x30   : > { %s324_s17 = sand.u32 1, %s1951_s29   ;;  %s2651_s18 = sshll.u32 %s2100_s8, 3 }
  0x31   : > { %2673 = sst [smem:[#allocation23_spill]] %s2110_s16  ;;  %s328_s10 = scalar_lea.vmem [#allocation6], %s2651_s18 }
  0x32   : > { %s2674_s1 = sld [smem:[#allocation24_spill]]  ;;  %s341_s24 = sshll.u32 %s328_s10, 4  ;;  %s342_s24 = int_to_ptr.vmem [resolvable:$true] %s341_s24 }
  0x33   : > { %s2124_s7 = scalar_lea.sflag [#allocation7], %s324_s17  ;;  %p2649_p9 = pneg %p2105_p2 }
  0x34   : > { %s1766_s21 = scalar_lea.vmem %s342_s24, 128  ;;  %s1956_s19 = smov [#allocation6]  }
  0x35   : > { %p1767_p10 = scmp.ne.s32.totalorder %s342_s24, %s1766_s21  ;;  %s1771_s20 = sshll.u32 %s1956_s19, 4  ;;  %s1772_s20 = int_to_ptr.vmem [resolvable:$false] %s1771_s20 }
  0x36   : > { %s1773_s23 = scalar_lea.vmem %s1772_s20, 256  ;;  %p1774_p5 = scmp.lt.s32.totalorder %s342_s24, %s1772_s20 }
  0x37   : > { %p1769_p13 = pnand %p1767_p10, %p2649_p9  ;;  %p1775_p7 = scmp.lt.s32.totalorder %s1773_s23, %s1766_s21 }
  0x38   : > { %s339_s28 = scalar_lea.hbm %s2674_s1, %s2103_s12 }
  0x39   : > { %p1770_p0 = pneg %p1769_p13  ;;  %p1776_p1 = por %p1775_p7, %p1774_p5 }
  0x3b   : > { %p1777_p12 = pnand %p1776_p1, %p1770_p0 }
  0x3d   : > { %1780 = shalt.err (!%p1777_p12)
}
  0x3e   : > { %1638 = dma.hbm_to_vmem [thread:$0]  (!%p2105_p2), %s339_s28, 128, %s342_s24, %s2124_s7  }
  0x3f   : > { %s1957_s3 = smov [#allocation11]   ;;  %s1410_s15 = sshll.u32 %s2100_s8, 7 }
  0x40   : > { %s284_s10 = sshll.u32 %s1957_s3, 4  ;;  %p2675_p13 = pneg %p2066_p11  ;;  %s285_s10 = int_to_ptr.vmem [resolvable:$true] %s284_s10 }
  0x41   : > { %s1792_s17 = scalar_lea.vmem %s285_s10, 1024  ;;  %p1800_p3 = scmp.lt.s32.totalorder %s285_s10, %s285_s10 }
  0x42   : > { %p1793_p10 = scmp.ne.s32.totalorder %s285_s10, %s1792_s17  ;;  %p1801_p5 = scmp.lt.s32.totalorder %s1792_s17, %s1792_s17 }
  0x44   : > { %p1795_p9 = pnand %p1793_p10, %p2675_p13  ;;  %p1802_p1 = por %p1801_p5, %p1800_p3 }
  0x46   : > { %p1796_p6 = pneg %p1795_p9 }
  0x48   : > { %p1803_p12 = pnand %p1802_p1, %p1796_p6 }
  0x4a   : > { %1806 = shalt.err (!%p1803_p12)
}
  0x4b   : > { %s2676_s23 = smov 4   ;;  %s2677_s21 = smov 64  }
  0x4c   : > { %s2678_s5 = sld [smem:[#allocation26_spill]]  ;;  %s305_s19 = scalar_lea.vmem [#allocation3], %s1410_s15 }
  0x4d   : > { %s314_s20 = sshll.u32 %s305_s19, 4  ;;  %s302_s3 = scalar_lea.sflag [#allocation4], %s2100_s8  ;;  %s315_s20 = int_to_ptr.vmem [resolvable:$true] %s314_s20 }
  0x4e   : > { %s1820_s18 = scalar_lea.vmem %s315_s20, 2048  ;;  %p2679_p6 = pneg %p2105_p2 }
  0x4f   : > { %p1821_p9 = scmp.ne.s32.totalorder %s315_s20, %s1820_s18  ;;  %s1958_s14 = smov [#allocation3]  }
  0x50   : > { %s1825_s17 = sshll.u32 %s1958_s14, 4  ;;  %s1826_s17 = int_to_ptr.vmem [resolvable:$false] %s1825_s17 }
  0x51   : > { %p1823_p3 = pnand %p1821_p9, %p2679_p6  ;;  %s1827_s1 = scalar_lea.vmem %s1826_s17, 4096 }
  0x52   : > { %1631 = dma.hbm_to_vmem [thread:$0]  (!%p2066_p11), %s2678_s5, 1024, %s285_s10, [#allocation10], %s2677_s21, %s2677_s21, %s2676_s23  }
  0x53   : > { %p1824_p0 = pneg %p1823_p3  ;;  %p1828_p7 = scmp.lt.s32.totalorder %s315_s20, %s1826_s17 }
  0x54   : > { %p1829_p10 = scmp.lt.s32.totalorder %s1827_s1, %s1820_s18 }
  0x56   : > { %p1830_p13 = por %p1829_p10, %p1828_p7 }
  0x58   : > { %p1831_p5 = pnand %p1830_p13, %p1824_p0 }
  0x5a   : > { %1834 = shalt.err (!%p1831_p5)
}
  0x5b   : > { %s1959_s10 = smov 128   ;;  %s1960_s15 = smov 8  }
  0x5c   : > { %s2680_s24 = scalar_lea.hbm %s2632_s0, %s2103_s12  ;;  %s1452_s28 = sadd.s32 1920, %s2103_s12 }
  0x5d   : > { %1635 = dma.hbm_to_vmem [thread:$0]  (!%p2105_p2), %s2680_s24, 2048, %s315_s20, %s302_s3, %s1959_s10, %s1959_s10, %s1960_s15  }
  0x5e   : > { %s2681_s19 = sshll.u32 %s2100_s8, 3  ;;  %s363_s5 = scalar_lea.hbm %s2634_s2, %s1452_s28 }
  0x5f   : > { %s352_s14 = scalar_lea.vmem [#allocation8], %s2681_s19  ;;  %p2682_p1 = pmov %p2679_p6 }
  0x60   : > { %s365_s1 = sshll.u32 %s352_s14, 4  ;;  %s1961_s26 = smov [#allocation8]   ;;  %s366_s1 = int_to_ptr.vmem [resolvable:$true] %s365_s1 }
  0x61   : > { %s1848_s16 = scalar_lea.vmem %s366_s1, 128  ;;  %s1853_s29 = sshll.u32 %s1961_s26, 4  ;;  %s1854_s29 = int_to_ptr.vmem [resolvable:$false] %s1853_s29 }
  0x62   : > { %p1849_p11 = scmp.ne.s32.totalorder %s366_s1, %s1848_s16  ;;  %s1855_s23 = scalar_lea.vmem %s1854_s29, 256 }
  0x63   : > { %p1856_p6 = scmp.lt.s32.totalorder %s366_s1, %s1854_s29  ;;  %p1857_p3 = scmp.lt.s32.totalorder %s1855_s23, %s1848_s16 }
  0x64   : > { %p1851_p12 = pnand %p1849_p11, %p2682_p1 }
  0x65   : > { %p1858_p0 = por %p1857_p3, %p1856_p6 }
  0x66   : > { %p1852_p9 = pneg %p1851_p12 }
  0x68   : > { %p1859_p7 = pnand %p1858_p0, %p1852_p9 }
  0x6a   : > { %1862 = shalt.err (!%p1859_p7)
}
  0x6b   : > { %1641 = dma.hbm_to_vmem [thread:$0]  (!%p2105_p2), %s363_s5, 128, %s366_s1, %s2124_s7  }
  0x6c   : > { %374 = sbr.rel (%p2057_p8) target bundleno = 634 (0x27a), region = 48  ;;  %s2172_s8 = sand.u32 (!%p2057_p8), 1, %s1935_s25  }
  0x6d   : > { %s1420_s26 = sshll.u32 (!%p2057_p8), %s2172_s8, 7  ;;  %s377_s29 = scalar_lea.sflag (!%p2057_p8), [#allocation4], %s2172_s8 }
  0x6e   : > { %s2178_s12 = scalar_lea.vmem (!%p2057_p8), [#allocation3], %s1420_s26 }
  0x71   : > { %1914 = dma.done.wait (%p2047_p4), %s377_s29, 2048  }
  0x72   : > { %1916 = vsyncadd (%p2047_p4), %s377_s29, 4294965248  ;;  %s385_s5 = sand.u32 1, %s2038_s30   ;;  %s1421_s7 = sshll.u32 %s2172_s8, 3 }
  0x73   : > { %s386_s11 = scalar_lea.sflag [#allocation7], %s385_s5  ;;  %s2186_s13 = scalar_lea.vmem [#allocation6], %s1421_s7 }
  0x74   : > { %1918 = dma.done.wait (%p2047_p4), %s386_s11, 256  }
  0x75   : > { %1920 = vsyncadd (%p2047_p4), %s386_s11, 4294967040  ;;  %s2192_s16 = scalar_lea.vmem [#allocation8], %s1421_s7  ;;  %p2683_p8 = scmp.eq.s32.totalorder %s2038_s30, 0 }
  0x77   : > { %1922 = dma.done.wait (%p2683_p8), [#allocation10], 2048   ;;  %p2684_p2 = pmov %p2683_p8 }
  0x78   : > { %v1710_v0 = vld [vmem:[#allocation9 + $0x38] sm:$0xff]   ;;  %v1711_v1 = vld [vmem:[#allocation9 + $0x30] sm:$0xff]   ;;  %v1712_v2 = vld [vmem:[#allocation9 + $0x28] sm:$0xff]   ;;  %v1962_v22 = vmov 0.0   ;;  %vm856_vm0 = vcmask 1041408   ;;  %vm1963_vm1 = vmmov 0  }
  0x79   : > { %1924 = vsyncadd (%p2684_p2), [#allocation10], 4294965248  ;;  %1505 = vmatprep.subr.bf16.mxu0 %v1710_v0  ;;  %v2198_v3 = vld [vmem:[#allocation9 + $0x20] sm:$0xff]   ;;  %v2202_v5 = vld [vmem:[%s2178_s12 + $0x8] sm:$0xff]  ;;  %s2454_s10 = scalar_lea.vmem [#allocation12], %s1420_s26  ;;  %s1453_s15 = sshll.u32 %s1943_s27, 11 }
  0x7a   : > { %1506 = vmatpush3.bf16.msra.mxu0 %v1710_v0  ;;  %v491_v4 = vld [vmem:[%s2178_s12] sm:$0xff]  ;;  %v1714_v7 = vld [vmem:[#allocation9 + $0x18] sm:$0xff]   ;;  %v2209_v9 = vld [vmem:[#allocation11 + $0x30] sm:$0xff]   ;;  %s1251_s21 = sshll.u32 %s2454_s10, 4  ;;  %s2687_s19 = sld [smem:[#allocation27_spill]]  ;;  %s2583_s21 = int_to_ptr.vmem [resolvable:$true] %s1251_s21 }
  0x7b   : > { %1507 = vmatprep.subr.bf16.mxu0 %v1711_v1  ;;  %v507_v6 = vpack.c.bf16 %v2202_v5, %v491_v4  ;;  %v2206_v8 = vld [vmem:[#allocation11 + $0x38] sm:$0xff]   ;;  %v2211_v10 = vld [vmem:[#allocation9 + $0x10] sm:$0xff]   ;;  %v2215_v11 = vld [vmem:[#allocation9 + $0x8] sm:$0xff]   ;;  %s1236_s1 = scalar_lea.sflag [#allocation5], %s2172_s8  ;;  %s1863_s27 = scalar_lea.vmem %s2583_s21, 2048 }
  0x7c   : > { %1537 = vmatprep.subr.bf16.mxu1 %v2206_v8  ;;  %v2218_v12 = vld [vmem:[#allocation11 + $0x28] sm:$0xff]   ;;  %v2223_v13 = vld [vmem:[#allocation11 + $0x20] sm:$0xff]   ;;  %v2229_v15 = vld [vmem:[#allocation11 + $0x18] sm:$0xff]   ;;  %p1864_p4 = scmp.ne.s32.totalorder %s2583_s21, %s1863_s27  ;;  %p2688_p10 = scmp.ne.s32.totalorder %s2671_s22, 0 }
  0x7d   : > { %1521 = vmatprep.mubr.bf16.mxu0 %v507_v6  ;;  %1538 = vmatpush3.bf16.msra.mxu1 %v2206_v8  ;;  %v1717_v14 = vld [vmem:[#allocation9] sm:$0xff]   ;;  %v2233_v16 = vld [vmem:[%s2178_s12 + $0x10] sm:$0xff]  ;;  %v2236_v17 = vld [vmem:[%s2178_s12 + $0x18] sm:$0xff]  ;;  %s1964_s18 = smov [#allocation12]  }
  0x7e   : > { %1508 = vmatpush3.bf16.msra.mxu0 %v1711_v1  ;;  %1539 = vmatprep.subr.bf16.mxu1 %v2209_v9  ;;  %v2239_v18 = vld [vmem:[%s2178_s12 + $0x20] sm:$0xff]  ;;  %v2242_v19 = vld [vmem:[%s2178_s12 + $0x28] sm:$0xff]  ;;  %v508_v20 = vpack.c.bf16 %v2236_v17, %v2233_v16  ;;  %v2253_v23 = vld [vmem:[%s2178_s12 + $0x30] sm:$0xff]  ;;  %p1865_p13 = pnand %p1864_p4, %p2688_p10  ;;  %s1867_s17 = sshll.u32 %s1964_s18, 4  ;;  %s1868_s17 = int_to_ptr.vmem [resolvable:$false] %s1867_s17 }
  0x7f   : > { %1509 = vmatprep.subr.bf16.mxu0 %v1712_v2  ;;  %v509_v21 = vpack.c.bf16 %v2242_v19, %v2239_v18  ;;  %v2256_v24 = vld [vmem:[%s2178_s12 + $0x38] sm:$0xff]  ;;  %v2260_v25 = vld [vmem:[%s2178_s12 + $0x40] sm:$0xff]  ;;  %v2263_v26 = vld [vmem:[%s2178_s12 + $0x48] sm:$0xff]  ;;  %s1869_s23 = scalar_lea.vmem %s1868_s17, 4096  ;;  %p1870_p11 = scmp.lt.s32.totalorder %s2583_s21, %s1868_s17 }
  0x80   : > { %v510_v27 = vpack.c.bf16 %v2256_v24, %v2253_v23  ;;  %v511_v28 = vpack.c.bf16 %v2263_v26, %v2260_v25  ;;  %v2271_v29 = vld [vmem:[%s2178_s12 + $0x50] sm:$0xff]  ;;  %v2274_v30 = vld [vmem:[%s2178_s12 + $0x58] sm:$0xff]  ;;  %v2278_v31 = vld [vmem:[%s2178_s12 + $0x60] sm:$0xff]  ;;  %s2581_s14 = scalar_lea.hbm %s2687_s19, %s1453_s15  ;;  %p1866_p5 = pneg %p1865_p13 }
  0x81   : > { %1540 = vmatpush3.bf16.msra.mxu1 %v2209_v9  ;;  %v2281_v32 = vld [vmem:[%s2178_s12 + $0x68] sm:$0xff]  ;;  %v512_v33 = vpack.c.bf16 %v2274_v30, %v2271_v29  ;;  %v2290_v35 = vld [vmem:[%s2178_s12 + $0x70] sm:$0xff]  ;;  %v2293_v36 = vld [vmem:[%s2178_s12 + $0x78] sm:$0xff]  ;;  %p1871_p1 = scmp.lt.s32.totalorder %s1869_s23, %s1863_s27 }
  0x82   : > { %1510 = vmatpush3.bf16.msra.mxu0 %v1712_v2  ;;  %1541 = vmatprep.subr.bf16.mxu1 %v2218_v12  ;;  %v513_v34 = vpack.c.bf16 %v2281_v32, %v2278_v31  ;;  %v852_v37 = vld [vmem:[%s2192_s16] sm:$0x3]  ;;  %v514_v38 = vpack.c.bf16 %v2293_v36, %v2290_v35  ;;  %v851_v40 = vld [vmem:[%s2186_s13 + $0x6] sm:$0x3]  ;;  %v2322_v48 = vld [vmem:[%s2636_s4] ss:$0 sm:$0xff] }
  0x83   : > { %1511 = vmatprep.subr.bf16.mxu0 %v2198_v3  ;;  %v854_v39 = vrot.slane %v852_v37, 6  ;;  %v2306_v43 = vld [vmem:[#allocation11 + $0x10] sm:$0xff]   ;;  %v2310_v44 = vld [vmem:[#allocation11 + $0x8] sm:$0xff]   ;;  %v2314_v45 = vld [vmem:[#allocation11] sm:$0xff]   ;;  %p1872_p12 = por %p1871_p1, %p1870_p11 }
  0x85   : > { %1542 = vmatpush3.bf16.msra.mxu1 %v2218_v12  ;;  %v857_v41 = vsel %vm856_vm0, %v851_v40, %v854_v39  ;;  %p1873_p9 = pnand %p1872_p12, %p1866_p5 }
  0x86   : > { %1512 = vmatpush3.bf16.msra.mxu0 %v2198_v3  ;;  %1543 = vmatprep.subr.bf16.mxu1 %v2223_v13  ;;  %v858_v42 = vpack.c.bf16 %v857_v41, %v857_v41 }
  0x87   : > { %1513 = vmatprep.subr.bf16.mxu0 %v1714_v7 }
  0x89   : > { %1544 = vmatpush3.bf16.msra.mxu1 %v2223_v13 }
  0x8a   : > { %1514 = vmatpush3.bf16.msra.mxu0 %v1714_v7  ;;  %1545 = vmatprep.subr.bf16.mxu1 %v2229_v15 }
  0x8b   : > { %1515 = vmatprep.subr.bf16.mxu0 %v2211_v10 }
  0x8d   : > { %1546 = vmatpush3.bf16.msra.mxu1 %v2229_v15 }
  0x8e   : > { %1516 = vmatpush3.bf16.msra.mxu0 %v2211_v10  ;;  %1547 = vmatprep.subr.bf16.mxu1 %v2306_v43 }
  0x8f   : > { %1517 = vmatprep.subr.bf16.mxu0 %v2215_v11 }
  0x91   : > { %1548 = vmatpush3.bf16.msra.mxu1 %v2306_v43 }
  0x92   : > { %1518 = vmatpush3.bf16.msra.mxu0 %v2215_v11  ;;  %1549 = vmatprep.subr.bf16.mxu1 %v2310_v44 }
  0x93   : > { %1519 = vmatprep.subr.bf16.mxu0 %v1717_v14 }
  0x95   : > { %1550 = vmatpush3.bf16.msra.mxu1 %v2310_v44 }
  0x96   : > { %1520 = vmatpush3.bf16.msra.mxu0 %v1717_v14  ;;  %1551 = vmatprep.subr.bf16.mxu1 %v2314_v45 }
  0x97   : > { %1569 = vmatprep.subr.bf16.mxu0 %v1962_v22 }
  0x99   : > { %1522 = vmatmul.mubr.bf16.vlgmr.msra.gmra.mxu0 %v508_v20  ;;  %1552 = vmatpush3.bf16.msra.mxu1 %v2314_v45 }
  0x9a   : > { %1570 = vmatpush3.bf16.msra.mxu0 %v1710_v0  ;;  %1525 = vmatprep.mubr.bf16.mxu0 %v509_v21 }
  0x9b   : > { %1571 = vmatprep.subr.bf16.mxu0 %v1962_v22  ;;  %1589 = vmatprep.subr.bf16.mxu1 %v1962_v22 }
  0x9e   : > { %1572 = vmatpush3.bf16.msra.mxu0 %v1711_v1 }
  0x9f   : > { %1573 = vmatprep.subr.bf16.mxu0 %v1962_v22 }
  0xa1   : > { %1526 = vmatmul.mubr.bf16.gmra.mxu0 %v510_v27 }
  0xa2   : > { %1574 = vmatpush3.bf16.msra.mxu0 %v1712_v2  ;;  %1529 = vmatprep.mubr.bf16.mxu0 %v511_v28 }
  0xa3   : > { %1575 = vmatprep.subr.bf16.mxu0 %v1962_v22 }
  0xa6   : > { %1576 = vmatpush3.bf16.msra.mxu0 %v2198_v3 }
  0xa7   : > { %1577 = vmatprep.subr.bf16.mxu0 %v1962_v22 }
  0xa9   : > { %1530 = vmatmul.mubr.bf16.gmra.mxu0 %v512_v33 }
  0xaa   : > { %1578 = vmatpush3.bf16.msra.mxu0 %v1714_v7  ;;  %1533 = vmatprep.mubr.bf16.mxu0 %v513_v34 }
  0xab   : > { %1579 = vmatprep.subr.bf16.mxu0 %v1962_v22 }
  0xae   : > { %1580 = vmatpush3.bf16.msra.mxu0 %v2211_v10 }
  0xaf   : > { %1581 = vmatprep.subr.bf16.mxu0 %v1962_v22 }
  0xb1   : > { %1534 = vmatmul.mubr.bf16.gmra.mxu0 %v514_v38 }
  0xb2   : > { %1582 = vmatpush3.bf16.msra.mxu0 %v2215_v11  ;;  %1585 = vmatprep.mubr.msk.bf16.mxu0 %vm1963_vm1, %v1962_v22 }
  0xb3   : > { %1583 = vmatprep.subr.bf16.mxu0 %v1962_v22 }
  0xb6   : > { %1584 = vmatpush3.bf16.msra.mxu0 %v1717_v14 }
  0xb9   : > { %1586 = vmatmul.mubr.bf16.vlgmr.msra.gmra.mxu0 %v858_v42 }
 0x159   : > { %v1523_v46 = vpop.f32.mrf.mxu0 }
 0x15a   : > { %v612_v52 = vadd.f32 %v1523_v46, %v2322_v48 }
 0x15b   : > { %v603_v47 = vpop.f32.mrf.mxu0 }
 0x15c   : > { %v604_v50 = vadd.f32 %v2322_v48, %v603_v47  ;;  %v668_v59 = vmax.f32 %v612_v52, 0.0 }
 0x15d   : > { %v1524_v49 = vpop.f32.mrf.mxu0 }
 0x15e   : > { %v615_v51 = vadd.f32 %v1524_v49, %v2322_v48  ;;  %v666_v57 = vmax.f32 %v604_v50, 0.0 }
 0x15f   : > { %v606_v53 = vpop.f32.mrf.mxu0 }
 0x160   : > { %v607_v54 = vadd.f32 %v2322_v48, %v606_v53  ;;  %v669_v55 = vmax.f32 %v615_v51, 0.0 }
 0x161   : > { %v1527_v56 = vpop.f32.mrf.mxu0 }
 0x162   : > { %v667_v58 = vmax.f32 %v607_v54, 0.0  ;;  %v683_v62 = vpack.c.bf16 %v669_v55, %v668_v59  ;;  %v628_v2 = vadd.f32 %v1527_v56, %v2322_v48 }
 0x163   : > { %v619_v60 = vpop.f32.mrf.mxu0 }
 0x164   : > { %v682_v61 = vpack.c.bf16 %v667_v58, %v666_v57  ;;  %v620_v0 = vadd.f32 %v2322_v48, %v619_v60  ;;  %v672_v14 = vmax.f32 %v628_v2, 0.0 }
 0x165   : > { %v1528_v63 = vpop.f32.mrf.mxu0 }
 0x166   : > { %v631_v1 = vadd.f32 %v1528_v63, %v2322_v48  ;;  %1553 = vmatprep.mubr.bf16.mxu1 %v682_v61  ;;  %v670_v10 = vmax.f32 %v620_v0, 0.0 }
 0x167   : > { %v622_v3 = vpop.f32.mrf.mxu0  ;;  %1554 = vmatmul.mubr.bf16.vlgmr.msra.gmra.mxu1 %v683_v62 }
 0x168   : > { %v623_v4 = vadd.f32 %v2322_v48, %v622_v3  ;;  %1590 = vmatpush3.bf16.msra.mxu1 %v2206_v8  ;;  %v673_v6 = vmax.f32 %v631_v1, 0.0 }
 0x169   : > { %v1531_v7 = vpop.f32.mrf.mxu0  ;;  %1591 = vmatprep.subr.bf16.mxu1 %v1962_v22 }
 0x16a   : > { %v671_v11 = vmax.f32 %v623_v4, 0.0  ;;  %v685_v27 = vpack.c.bf16 %v673_v6, %v672_v14  ;;  %v644_v8 = vadd.f32 %v1531_v7, %v2322_v48 }
 0x16b   : > { %v635_v20 = vpop.f32.mrf.mxu0 }
 0x16c   : > { %v684_v21 = vpack.c.bf16 %v671_v11, %v670_v10  ;;  %1592 = vmatpush3.bf16.msra.mxu1 %v2209_v9  ;;  %v636_v33 = vadd.f32 %v2322_v48, %v635_v20  ;;  %v676_v42 = vmax.f32 %v644_v8, 0.0 }
 0x16d   : > { %v1532_v28 = vpop.f32.mrf.mxu0  ;;  %1593 = vmatprep.subr.bf16.mxu1 %v1962_v22 }
 0x16e   : > { %v647_v34 = vadd.f32 %v1532_v28, %v2322_v48  ;;  %1557 = vmatprep.mubr.bf16.mxu1 %v684_v21  ;;  %v674_v9 = vmax.f32 %v636_v33, 0.0 }
 0x16f   : > { %v638_v37 = vpop.f32.mrf.mxu0  ;;  %1558 = vmatmul.mubr.bf16.gmra.mxu1 %v685_v27 }
 0x170   : > { %v639_v38 = vadd.f32 %v2322_v48, %v638_v37  ;;  %1594 = vmatpush3.bf16.msra.mxu1 %v2218_v12  ;;  %v677_v39 = vmax.f32 %v647_v34, 0.0 }
 0x171   : > { %v1535_v40 = vpop.f32.mrf.mxu0  ;;  %1595 = vmatprep.subr.bf16.mxu1 %v1962_v22 }
 0x172   : > { %v675_v41 = vmax.f32 %v639_v38, 0.0  ;;  %v687_v49 = vpack.c.bf16 %v677_v39, %v676_v42  ;;  %v660_v12 = vadd.f32 %v1535_v40, %v2322_v48 }
 0x173   : > { %v651_v46 = vpop.f32.mrf.mxu0 }
 0x174   : > { %v686_v47 = vpack.c.bf16 %v675_v41, %v674_v9  ;;  %1596 = vmatpush3.bf16.msra.mxu1 %v2223_v13  ;;  %v652_v51 = vadd.f32 %v2322_v48, %v651_v46  ;;  %v680_v58 = vmax.f32 %v660_v12, 0.0 }
 0x175   : > { %v1536_v50 = vpop.f32.mrf.mxu0  ;;  %1597 = vmatprep.subr.bf16.mxu1 %v1962_v22 }
 0x176   : > { %v663_v52 = vadd.f32 %v1536_v50, %v2322_v48  ;;  %1561 = vmatprep.mubr.bf16.mxu1 %v686_v47  ;;  %v678_v13 = vmax.f32 %v652_v51, 0.0 }
 0x177   : > { %v654_v53 = vpop.f32.mrf.mxu0  ;;  %1562 = vmatmul.mubr.bf16.gmra.mxu1 %v687_v49 }
 0x178   : > { %v655_v54 = vadd.f32 %v2322_v48, %v654_v53  ;;  %1598 = vmatpush3.bf16.msra.mxu1 %v2229_v15  ;;  %v681_v55 = vmax.f32 %v663_v52, 0.0 }
 0x179   : > { %v893_v56 = vpop.f32.mrf.mxu0  ;;  %1599 = vmatprep.subr.bf16.mxu1 %v1962_v22 }
 0x17a   : > { %v679_v57 = vmax.f32 %v655_v54, 0.0  ;;  %v894_v59 = vadd.f32 %v2322_v48, %v893_v56  ;;  %v689_v62 = vpack.c.bf16 %v681_v55, %v680_v58 }
 0x17b   : > { %v1587_v60 = vpop.f32.mrf.mxu0 }
 0x17c   : > { %v688_v61 = vpack.c.bf16 %v679_v57, %v678_v13  ;;  %1600 = vmatpush3.bf16.msra.mxu1 %v2306_v43  ;;  %v899_v0 = vmax.f32 %v894_v59, 0.0  ;;  %v941_v43 = vlaneseq }
 0x17d   : > { %v896_v63 = vpop.f32.mrf.mxu0  ;;  %1601 = vmatprep.subr.bf16.mxu1 %v1962_v22 }
 0x17e   : > { %1565 = vmatprep.mubr.bf16.mxu1 %v688_v61  ;;  %v900_v48 = vpack.c.bf16 %v899_v0, %v899_v0  ;;  %v942_v2 = vshrl.u32 %v941_v43, 7 }
 0x17f   : > { %1566 = vmatmul.mubr.bf16.gmra.mxu1 %v689_v62  ;;  %v1588_v15 = vpop.f32.mrf.mxu0 }
 0x180   : > { %1602 = vmatpush3.bf16.msra.mxu1 %v2310_v44  ;;  %1605 = vmatprep.mubr.msk.bf16.mxu1 %vm1963_vm1, %v1962_v22  ;;  %v961_v6 = vsub.s32 2, %v942_v2  ;;  %v997_v44 = vsub.s32 0, %v942_v2  ;;  %v1443_v7 = vadd.s32 4294967294, %v942_v2  ;;  %v1101_v11 = vsub.s32 3, %v942_v2 }
 0x181   : > { %1603 = vmatprep.subr.bf16.mxu1 %v1962_v22  ;;  %v958_v22 = vld [vmem:[%s2638_s6] sm:$0x1f]  ;;  %v1153_v27 = vsub.s32 4, %v942_v2  ;;  %vm944_vm2 = vcmp.lt.s32.totalorder %v942_v2, 2 }
 0x182   : > { %v2364_v20 = vrot.slane %v958_v22, %v961_v6  ;;  %v2366_v21 = vrot.slane %v958_v22, %v997_v44  ;;  %v946_v28 = vadd.s32 128, %v1443_v7  ;;  %v2370_v37 = vrot.slane %v958_v22, %v1101_v11 }
 0x183   : > { %v2376_v41 = vrot.slane %v958_v22, %v1153_v27 }
 0x184   : > { %1604 = vmatpush3.bf16.msra.mxu1 %v2314_v45  ;;  %v1049_v45 = vsub.s32 1, %v942_v2  ;;  %v2379_v42 = vsel %vm944_vm2, %v1443_v7, %v946_v28 }
 0x185   : > { %vm950_vm3 = vcmp.ge.s32.totalorder %v2379_v42, 0  ;;  %vm951_vm4 = vcmp.lt.s32.totalorder %v2379_v42, 128 }
 0x186   : > { %v2368_v8 = vrot.slane %v958_v22, %v1049_v45  ;;  %vm2529_vm5 = vmand %vm950_vm3, %vm951_vm4 }
 0x187   : > { %1606 = vmatmul.mubr.bf16.vlgmr.msra.gmra.mxu1 %v900_v48 }
 0x227   : > { %v1555_v1 = vpop.f32.mrf.mxu1 }
 0x228   : > { %837 = vst [vmem:[#allocation2 + $0x20] sm:$0xff] %v1555_v1  ;;  %v965_v39 = vmul.f32 %v1555_v1, %v2364_v20  ;;  %v2382_v46 = vadd.f32 %v1555_v1, %v2233_v16 }
 0x229   : > { %v2358_v3 = vpop.f32.mrf.mxu1 }
 0x22a   : > { %835 = vst [vmem:[#allocation2 + $0x10] sm:$0xff] %v2358_v3 }
 0x22b   : > { %v1556_v4 = vpop.f32.mrf.mxu1 }
 0x22c   : > { %838 = vst [vmem:[#allocation2 + $0x28] sm:$0xff] %v1556_v4  ;;  %v966_v47 = vmul.f32 %v1556_v4, %v2364_v20  ;;  %v2386_v49 = vadd.f32 %v1556_v4, %v2236_v17 }
 0x22d   : > { %v775_v10 = vpop.f32.mrf.mxu1 }
 0x22e   : > { %836 = vst [vmem:[#allocation2 + $0x18] sm:$0xff] %v775_v10  ;;  %v964_v50 = vmul.f32 %v2364_v20, %v775_v10  ;;  %v2394_v57 = vadd.f32 %v775_v10, %v2202_v5 }
 0x22f   : > { %v1559_v14 = vpop.f32.mrf.mxu1 }
 0x230   : > { %841 = vst [vmem:[#allocation2 + $0x40] sm:$0xff] %v1559_v14  ;;  %v2397_v17 = vmul.f32 %v1559_v14, %v2364_v20  ;;  %v2401_v60 = vadd.f32 %v1559_v14, %v2253_v23 }
 0x231   : > { %v788_v33 = vpop.f32.mrf.mxu1 }
 0x232   : > { %839 = vst [vmem:[#allocation2 + $0x30] sm:$0xff] %v788_v33  ;;  %v967_v61 = vmul.f32 %v2364_v20, %v788_v33  ;;  %v2405_v62 = vadd.f32 %v788_v33, %v2239_v18 }
 0x233   : > { %v982_v34 = vld [vmem:[#allocation2 + $0x26] sm:$0xff]  ;;  %v2372_v38 = vpop.f32.mrf.mxu1 }
 0x234   : > { %v1002_v40 = vmul.f32 %v2366_v21, %v982_v34  ;;  %v1034_v9 = vld [vmem:[#allocation2 + $0x27] sm:$0xff]  ;;  %842 = vst [vmem:[#allocation2 + $0x48] sm:$0xff] %v2372_v38  ;;  %v970_v44 = vmul.f32 %v2372_v38, %v2364_v20 }
 0x235   : > { %v980_v51 = vld [vmem:[#allocation2 + $0x16] sm:$0xff]  ;;  %v981_v52 = vld [vmem:[#allocation2 + $0x1e] sm:$0xff]  ;;  %v2389_v53 = vpop.f32.mrf.mxu1  ;;  %v1054_v1 = vmul.f32 %v2368_v8, %v1034_v9 }
 0x236   : > { %v1032_v12 = vld [vmem:[#allocation2 + $0x17] sm:$0xff]  ;;  %v1085_v54 = vld [vmem:[#allocation2 + $0x21] sm:$0xff]  ;;  %v1000_v56 = vmul.f32 %v2366_v21, %v980_v51  ;;  %v1001_v13 = vmul.f32 %v2366_v21, %v981_v52  ;;  %840 = vst [vmem:[#allocation2 + $0x38] sm:$0xff] %v2389_v53  ;;  %v1018_v58 = vadd.f32 %v1002_v40, %v966_v47 }
 0x237   : > { %v1137_v55 = vld [vmem:[#allocation2 + $0x22] sm:$0xff]  ;;  %v1084_v59 = vld [vmem:[#allocation2 + $0x19] sm:$0xff]  ;;  %v2407_v63 = vpop.f32.mrf.mxu1  ;;  %v1052_v15 = vmul.f32 %v2368_v8, %v1032_v12  ;;  %v1105_v23 = vmul.f32 %v2370_v37, %v1085_v54 }
 0x238   : > { %v1033_v16 = vld [vmem:[#allocation2 + $0x1f] sm:$0xff]  ;;  %v1016_v0 = vadd.f32 %v1000_v56, %v964_v50  ;;  %v1017_v5 = vadd.f32 %v1001_v13, %v965_v39  ;;  %845 = vst [vmem:[#allocation2 + $0x60] sm:$0xff] %v2407_v63  ;;  %v1157_v2 = vmul.f32 %v2376_v41, %v1137_v55  ;;  %v1104_v45 = vmul.f32 %v2370_v37, %v1084_v59 }
 0x239   : > { %v1053_v48 = vmul.f32 %v2368_v8, %v1033_v16  ;;  %v1136_v43 = vld [vmem:[#allocation2 + $0x1a] sm:$0xff]  ;;  %v983_v4 = vld [vmem:[#allocation2 + $0x2e] sm:$0xff]  ;;  %v2417_v7 = vpop.f32.mrf.mxu1  ;;  %v1070_v27 = vadd.f32 %v1054_v1, %v1018_v58  ;;  %v968_v55 = vmul.f32 %v2364_v20, %v2389_v53 }
 0x23a   : > { %v1035_v18 = vld [vmem:[#allocation2 + $0x2f] sm:$0xff]  ;;  %v1068_v22 = vadd.f32 %v1052_v15, %v1016_v0  ;;  %v1003_v11 = vmul.f32 %v2366_v21, %v983_v4  ;;  %843 = vst [vmem:[#allocation2 + $0x50] sm:$0xff] %v2417_v7  ;;  %v1156_v28 = vmul.f32 %v2376_v41, %v1136_v43  ;;  %v971_v58 = vmul.f32 %v2364_v20, %v2417_v7 }
 0x23b   : > { %v1086_v6 = vld [vmem:[#allocation2 + $0x29] sm:$0xff]  ;;  %v1069_v10 = vadd.f32 %v1053_v48, %v1017_v5  ;;  %v1055_v33 = vmul.f32 %v2368_v8, %v1035_v18  ;;  %v2425_v9 = vpop.f32.mrf.mxu1  ;;  %v1089_v4 = vld [vmem:[#allocation2 + $0x41] sm:$0xff] }
 0x23c   : > { %v1138_v14 = vld [vmem:[#allocation2 + $0x2a] sm:$0xff]  ;;  %v1106_v34 = vmul.f32 %v2370_v37, %v1086_v6  ;;  %v1120_v47 = vadd.f32 %v1104_v45, %v1068_v22  ;;  %v1019_v51 = vadd.f32 %v1003_v11, %v967_v61  ;;  %846 = vst [vmem:[#allocation2 + $0x68] sm:$0xff] %v2425_v9  ;;  %v1141_v18 = vld [vmem:[#allocation2 + $0x42] sm:$0xff] }
 0x23d   : > { %v986_v39 = vld [vmem:[#allocation2 + $0x46] sm:$0xff]  ;;  %v1121_v50 = vadd.f32 %v1105_v23, %v1069_v10  ;;  %v1158_v54 = vmul.f32 %v2376_v41, %v1138_v14  ;;  %v984_v56 = vld [vmem:[#allocation2 + $0x36] sm:$0xff]  ;;  %v985_v13 = vld [vmem:[#allocation2 + $0x3e] sm:$0xff]  ;;  %v2434_v59 = vpop.f32.mrf.mxu1 }
 0x23e   : > { %v1038_v40 = vld [vmem:[#allocation2 + $0x47] sm:$0xff]  ;;  %v1006_v52 = vmul.f32 %v2366_v21, %v986_v39  ;;  %v1122_v12 = vadd.f32 %v1106_v34, %v1070_v27  ;;  %v1036_v16 = vld [vmem:[#allocation2 + $0x37] sm:$0xff]  ;;  %v1172_v0 = vadd.f32 %v1156_v28, %v1120_v47  ;;  %v1071_v5 = vadd.f32 %v1055_v33, %v1019_v51  ;;  %v1037_v48 = vld [vmem:[#allocation2 + $0x3f] sm:$0xff]  ;;  %844 = vst [vmem:[#allocation2 + $0x58] sm:$0xff] %v2434_v59 }
 0x23f   : > { %v1173_v61 = vadd.f32 %v1157_v2, %v1121_v50  ;;  %v1058_v15 = vmul.f32 %v2368_v8, %v1038_v40  ;;  %v1087_v43 = vld [vmem:[#allocation2 + $0x31] sm:$0xff]  ;;  %v1004_v6 = vmul.f32 %v2366_v21, %v984_v56  ;;  %v1005_v22 = vmul.f32 %v2366_v21, %v985_v13  ;;  %v1088_v10 = vld [vmem:[#allocation2 + $0x39] sm:$0xff]  ;;  %v2440_v45 = vpop.f32.mrf.mxu1 }
 0x240   : > { %v1174_v1 = vadd.f32 %v1158_v54, %v1122_v12  ;;  %v1022_v23 = vadd.f32 %v1006_v52, %v970_v44  ;;  %v1204_v2 = vadd.f32 %v2394_v57, %v1172_v0  ;;  %v1056_v14 = vmul.f32 %v2368_v8, %v1036_v16  ;;  %v1139_v28 = vld [vmem:[#allocation2 + $0x32] sm:$0xff]  ;;  %849 = vst [vmem:[#allocation2 + $0x80] sm:$0xff] %v2440_v45  ;;  %v1140_v40 = vld [vmem:[#allocation2 + $0x3a] sm:$0xff] }
 0x241   : > { %v1205_v11 = vadd.f32 %v2382_v46, %v1173_v61  ;;  %v1057_v27 = vmul.f32 %v2368_v8, %v1037_v48  ;;  %v1020_v33 = vadd.f32 %v1004_v6, %v968_v55  ;;  %v1021_v34 = vadd.f32 %v1005_v22, %v2397_v17  ;;  %v987_v47 = vld [vmem:[#allocation2 + $0x4e] sm:$0xff]  ;;  %v2450_v57 = vpop.f32.mrf.mxu1 }
 0x242   : > { %v1206_v44 = vadd.f32 %v2386_v49, %v1174_v1  ;;  %v1107_v39 = vmul.f32 %v2370_v37, %v1087_v43  ;;  %v1090_v50 = vld [vmem:[#allocation2 + $0x49] sm:$0xff]  ;;  %1220 = vst [vmem:[%s2454_s10 + $0x8] sm:$0xff] %v1204_v2  ;;  %v1109_v46 = vmul.f32 %v2370_v37, %v1089_v4  ;;  %v1161_v49 = vmul.f32 %v2376_v41, %v1141_v18 }
 0x243   : > { %1221 = vst [vmem:[%s2454_s10 + $0x10] sm:$0xff] %v1205_v11  ;;  %v1108_v17 = vmul.f32 %v2370_v37, %v1088_v10  ;;  %v1007_v51 = vmul.f32 %v2366_v21, %v987_v47  ;;  %847 = vst [vmem:[#allocation2 + $0x70] sm:$0xff] %v2450_v57  ;;  %v1072_v52 = vadd.f32 %v1056_v14, %v1020_v33  ;;  %v1039_v56 = vld [vmem:[#allocation2 + $0x4f] sm:$0xff]  ;;  %v990_v16 = vld [vmem:[#allocation2 + $0x66] sm:$0xff]  ;;  %v2465_v0 = vpop.f32.mrf.mxu1 }
 0x244   : > { %1222 = vst [vmem:[%s2454_s10 + $0x18] sm:$0xff] %v1206_v44  ;;  %v1073_v12 = vadd.f32 %v1057_v27, %v1021_v34  ;;  %v1123_v54 = vadd.f32 %v1107_v39, %v1071_v5  ;;  %v1159_v55 = vmul.f32 %v2376_v41, %v1139_v28  ;;  %v1142_v13 = vld [vmem:[#allocation2 + $0x4a] sm:$0xff]  ;;  %v1074_v61 = vadd.f32 %v1058_v15, %v1022_v23 }
 0x245   : > { %v1160_v48 = vmul.f32 %v2376_v41, %v1140_v40  ;;  %v1023_v43 = vadd.f32 %v1007_v51, %v971_v58  ;;  %v1110_v1 = vmul.f32 %v2370_v37, %v1090_v50  ;;  %850 = vst [vmem:[#allocation2 + $0x88] sm:$0xff] %v2465_v0  ;;  %v1124_v4 = vadd.f32 %v1108_v17, %v1072_v52  ;;  %v2471_v22 = vpop.f32.mrf.mxu1  ;;  %v988_v58 = vld [vmem:[#allocation2 + $0x56] sm:$0xff]  ;;  %v1042_v44 = vld [vmem:[#allocation2 + $0x67] sm:$0xff]  ;;  %v989_v33 = vld [vmem:[#allocation2 + $0x5e] sm:$0xff] }
 0x246   : > { %v1125_v18 = vadd.f32 %v1109_v46, %v1073_v12  ;;  %v1175_v6 = vadd.f32 %v1159_v55, %v1123_v54  ;;  %v1010_v5 = vmul.f32 %v2366_v21, %v990_v16  ;;  %v1059_v10 = vmul.f32 %v2368_v8, %v1039_v56  ;;  %848 = vst [vmem:[#allocation2 + $0x78] sm:$0xff] %v2471_v22  ;;  %v1040_v46 = vld [vmem:[#allocation2 + $0x57] sm:$0xff]  ;;  %v1041_v52 = vld [vmem:[#allocation2 + $0x5f] sm:$0xff] }
 0x247   : > { %v1126_v2 = vadd.f32 %v1110_v1, %v1074_v61  ;;  %v1162_v11 = vmul.f32 %v2376_v41, %v1142_v13  ;;  %v974_v15 = vmul.f32 %v2425_v9, %v2364_v20  ;;  %v1176_v23 = vadd.f32 %v1160_v48, %v1124_v4  ;;  %v2481_v34 = vpop.f32.mrf.mxu1  ;;  %v1091_v17 = vld [vmem:[#allocation2 + $0x51] sm:$0xff]  ;;  %v1092_v55 = vld [vmem:[#allocation2 + $0x59] sm:$0xff] }
 0x248   : > { %v1177_v14 = vadd.f32 %v1161_v49, %v1125_v18  ;;  %v1192_v27 = vadd.f32 %v2389_v53, %v2242_v19  ;;  %v1207_v28 = vadd.f32 %v2405_v62, %v1175_v6  ;;  %v1194_v39 = vadd.f32 %v2372_v38, %v2256_v24  ;;  %v1093_v19 = vld [vmem:[#allocation2 + $0x61] sm:$0xff]  ;;  %v1143_v56 = vld [vmem:[#allocation2 + $0x52] sm:$0xff] }
 0x249   : > { %v1075_v40 = vadd.f32 %v1059_v10, %v1023_v43  ;;  %v1178_v47 = vadd.f32 %v1162_v11, %v1126_v2  ;;  %v1026_v50 = vadd.f32 %v1010_v5, %v974_v15  ;;  %v972_v53 = vmul.f32 %v2364_v20, %v2434_v59  ;;  %v1607_v24 = vpop.f32.mrf.mxu1  ;;  %v1145_v5 = vld [vmem:[#allocation2 + $0x62] sm:$0xff]  ;;  %v1144_v11 = vld [vmem:[#allocation2 + $0x5a] sm:$0xff] }
 0x24a   : > { %v1208_v51 = vadd.f32 %v1192_v27, %v1176_v23  ;;  %v1209_v49 = vadd.f32 %v2401_v60, %v1177_v14  ;;  %1223 = vst [vmem:[%s2454_s10 + $0x20] sm:$0xff] %v1207_v28  ;;  %v1008_v62 = vmul.f32 %v2366_v21, %v988_v58  ;;  %v973_v38 = vmul.f32 %v2407_v63, %v2364_v20  ;;  %v991_v43 = vld [vmem:[#allocation2 + $0x6e] sm:$0xff] }
 0x24b   : > { %v1210_v12 = vadd.f32 %v1194_v39, %v1178_v47  ;;  %v1062_v60 = vmul.f32 %v2368_v8, %v1042_v44  ;;  %v1009_v54 = vmul.f32 %v2366_v21, %v989_v33  ;;  %v1195_v13 = vadd.f32 %v2417_v7, %v2260_v25  ;;  %v1094_v1 = vld [vmem:[#allocation2 + $0x69] sm:$0xff]  ;;  %v938_v4 = vpop.f32.mrf.mxu1 }
 0x24c   : > { %1224 = vst [vmem:[%s2454_s10 + $0x28] sm:$0xff] %v1208_v51  ;;  %1225 = vst [vmem:[%s2454_s10 + $0x30] sm:$0xff] %v1209_v49  ;;  %v1024_v16 = vadd.f32 %v1008_v62, %v972_v53  ;;  %v1060_v61 = vmul.f32 %v2368_v8, %v1040_v46  ;;  %v1111_v48 = vmul.f32 %v2370_v37, %v1091_v17  ;;  %v1146_v23 = vld [vmem:[#allocation2 + $0x6a] sm:$0xff] }
 0x24d   : > { %1226 = vst [vmem:[%s2454_s10 + $0x38] sm:$0xff] %v1210_v12  ;;  %v1078_v18 = vadd.f32 %v1062_v60, %v1026_v50  ;;  %v1113_v6 = vmul.f32 %v2370_v37, %v1093_v19  ;;  %v1025_v10 = vadd.f32 %v1009_v54, %v973_v38  ;;  %v1061_v2 = vmul.f32 %v2368_v8, %v1041_v52  ;;  %v1608_v14 = vpop.f32.mrf.mxu1  ;;  %v1043_v33 = vld [vmem:[#allocation2 + $0x6f] sm:$0xff] }
 0x24e   : > { %v1076_v15 = vadd.f32 %v1060_v61, %v1024_v16  ;;  %v1112_v25 = vmul.f32 %v2370_v37, %v1092_v55  ;;  %v1127_v7 = vadd.f32 %v1111_v48, %v1075_v40  ;;  %v1163_v58 = vmul.f32 %v2376_v41, %v1143_v56  ;;  %v992_v38 = vld [vmem:[#allocation2 + $0x76] sm:$0xff]  ;;  %v993_v56 = vld [vmem:[#allocation2 + $0x7e] sm:$0xff] }
 0x24f   : > { %v1077_v27 = vadd.f32 %v1061_v2, %v1025_v10  ;;  %v975_v28 = vmul.f32 %v2364_v20, %v2450_v57  ;;  %v1011_v44 = vmul.f32 %v2366_v21, %v991_v43  ;;  %v1114_v39 = vmul.f32 %v2370_v37, %v1094_v1  ;;  %v1097_v10 = vld [vmem:[#allocation2 + $0x81] sm:$0xff] }
 0x250   : > { %v1165_v47 = vmul.f32 %v2376_v41, %v1145_v5  ;;  %v1128_v50 = vadd.f32 %v1112_v25, %v1076_v15  ;;  %v1164_v46 = vmul.f32 %v2376_v41, %v1144_v11  ;;  %v1179_v17 = vadd.f32 %v1163_v58, %v1127_v7  ;;  %v1148_v58 = vld [vmem:[#allocation2 + $0x7a] sm:$0xff]  ;;  %v1149_v14 = vld [vmem:[#allocation2 + $0x82] sm:$0xff] }
 0x251   : > { %v1129_v40 = vadd.f32 %v1113_v6, %v1077_v27  ;;  %v1027_v51 = vadd.f32 %v1011_v44, %v975_v28  ;;  %v1130_v49 = vadd.f32 %v1114_v39, %v1078_v18  ;;  %v1166_v19 = vmul.f32 %v2376_v41, %v1146_v23  ;;  %v1096_v18 = vld [vmem:[#allocation2 + $0x79] sm:$0xff] }
 0x252   : > { %v1180_v53 = vadd.f32 %v1164_v46, %v1128_v50  ;;  %v1196_v62 = vadd.f32 %v2434_v59, %v2263_v26  ;;  %v1211_v52 = vadd.f32 %v1195_v13, %v1179_v17  ;;  %v1063_v24 = vmul.f32 %v2368_v8, %v1043_v33  ;;  %v994_v26 = vld [vmem:[#allocation2 + $0x86] sm:$0xff]  ;;  %v1044_v59 = vld [vmem:[#allocation2 + $0x77] sm:$0xff] }
 0x253   : > { %v1197_v12 = vadd.f32 %v2407_v63, %v2271_v29  ;;  %v1198_v60 = vadd.f32 %v2425_v9, %v2274_v30  ;;  %v1181_v54 = vadd.f32 %v1165_v47, %v1129_v40  ;;  %v1182_v55 = vadd.f32 %v1166_v19, %v1130_v49  ;;  %v1095_v13 = vld [vmem:[#allocation2 + $0x71] sm:$0xff]  ;;  %v1045_v30 = vld [vmem:[#allocation2 + $0x7f] sm:$0xff]  ;;  %v1046_v47 = vld [vmem:[#allocation2 + $0x87] sm:$0xff] }
 0x254   : > { %v1212_v16 = vadd.f32 %v1196_v62, %v1180_v53  ;;  %1227 = vst [vmem:[%s2454_s10 + $0x40] sm:$0xff] %v1211_v52  ;;  %v1079_v61 = vadd.f32 %v1063_v24, %v1027_v51  ;;  %v976_v29 = vmul.f32 %v2364_v20, %v2471_v22  ;;  %v1012_v63 = vmul.f32 %v2366_v21, %v992_v38  ;;  %v1147_v6 = vld [vmem:[#allocation2 + $0x72] sm:$0xff] }
 0x255   : > { %v1213_v48 = vadd.f32 %v1197_v12, %v1181_v54  ;;  %v1214_v43 = vadd.f32 %v1198_v60, %v1182_v55  ;;  %v977_v1 = vmul.f32 %v2440_v45, %v2364_v20  ;;  %v1013_v4 = vmul.f32 %v2366_v21, %v993_v56 }
 0x256   : > { %1228 = vst [vmem:[%s2454_s10 + $0x48] sm:$0xff] %v1212_v16  ;;  %v1014_v5 = vmul.f32 %v2366_v21, %v994_v26  ;;  %v1028_v2 = vadd.f32 %v1012_v63, %v976_v29  ;;  %v1064_v42 = vmul.f32 %v2368_v8, %v1044_v59  ;;  %v1115_v11 = vmul.f32 %v2370_v37, %v1095_v13 }
 0x257   : > { %1229 = vst [vmem:[%s2454_s10 + $0x50] sm:$0xff] %v1213_v48  ;;  %1230 = vst [vmem:[%s2454_s10 + $0x58] sm:$0xff] %v1214_v43  ;;  %v978_v15 = vmul.f32 %v2465_v0, %v2364_v20  ;;  %v1029_v25 = vadd.f32 %v1013_v4, %v977_v1  ;;  %v1065_v7 = vmul.f32 %v2368_v8, %v1045_v30  ;;  %v955_v23 = vsel %vm2529_vm5, %v2481_v34, 0.0  ;;  %v1135_v48 = vld [vmem:[#allocation2 + $0x12] sm:$0xff] }
 0x258   : > { %v1080_v27 = vadd.f32 %v1064_v42, %v1028_v2  ;;  %v1116_v28 = vmul.f32 %v2370_v37, %v1096_v18  ;;  %v1131_v44 = vadd.f32 %v1115_v11, %v1079_v61  ;;  %v1167_v33 = vmul.f32 %v2376_v41, %v1147_v6  ;;  %956 = vst [vmem:[#allocation2 + $0xe] sm:$0x3] %v955_v23 }
 0x259   : > { %957 = vst [vmem:[#allocation2 + $0x8e] sm:$0xc] %v955_v23  ;;  %v1199_v39 = vadd.f32 %v2450_v57, %v2278_v31  ;;  %v1117_v50 = vmul.f32 %v2370_v37, %v1097_v10  ;;  %v1081_v46 = vadd.f32 %v1065_v7, %v1029_v25  ;;  %v1030_v17 = vadd.f32 %v1014_v5, %v978_v15 }
 0x25a   : > { %v1132_v40 = vadd.f32 %v1116_v28, %v1080_v27  ;;  %v1168_v34 = vmul.f32 %v2376_v41, %v1148_v58  ;;  %v1183_v51 = vadd.f32 %v1167_v33, %v1131_v44  ;;  %v1169_v49 = vmul.f32 %v2376_v41, %v1149_v14 }
 0x25b   : > { %v1133_v19 = vadd.f32 %v1117_v50, %v1081_v46  ;;  %v1066_v53 = vmul.f32 %v2368_v8, %v1046_v47  ;;  %v1200_v31 = vadd.f32 %v2471_v22, %v2281_v32  ;;  %v1201_v52 = vadd.f32 %v2440_v45, %v2290_v35  ;;  %v1083_v35 = vld [vmem:[#allocation2 + $0x11] sm:$0xff] }
 0x25c   : > { %v1184_v62 = vadd.f32 %v1168_v34, %v1132_v40  ;;  %v1215_v57 = vadd.f32 %v1199_v39, %v1183_v51  ;;  %v963_v16 = vmul.f32 %v2364_v20, %v2358_v3  ;;  %v1103_v20 = vmul.f32 %v2370_v37, %v1083_v35 }
 0x25d   : > { %v1185_v24 = vadd.f32 %v1169_v49, %v1133_v19  ;;  %v1082_v38 = vadd.f32 %v1066_v53, %v1030_v17  ;;  %v1155_v63 = vmul.f32 %v2376_v41, %v1135_v48 }
 0x25e   : > { %v1216_v12 = vadd.f32 %v1200_v31, %v1184_v62  ;;  %1231 = vst [vmem:[%s2454_s10 + $0x60] sm:$0xff] %v1215_v57 }
 0x25f   : > { %v1217_v60 = vadd.f32 %v1201_v52, %v1185_v24  ;;  %v979_v54 = vld [vmem:[#allocation2 + $0xe] sm:$0xff] }
 0x260   : > { %v1031_v55 = vld [vmem:[#allocation2 + $0xf] sm:$0xff]  ;;  %1232 = vst [vmem:[%s2454_s10 + $0x68] sm:$0xff] %v1216_v12  ;;  %v999_v61 = vmul.f32 %v2366_v21, %v979_v54  ;;  %v1202_v21 = vadd.f32 %v2465_v0, %v2293_v36 }
 0x261   : > { %v1098_v56 = vld [vmem:[#allocation2 + $0x89] sm:$0xff]  ;;  %1233 = vst [vmem:[%s2454_s10 + $0x70] sm:$0xff] %v1217_v60  ;;  %v1051_v26 = vmul.f32 %v2368_v8, %v1031_v55  ;;  %v1726_v8 = vld [vmem:[%s2178_s12] sm:$0xff] }
 0x262   : > { %v1118_v32 = vmul.f32 %v2370_v37, %v1098_v56  ;;  %v1150_v22 = vld [vmem:[#allocation2 + $0x8a] sm:$0xff]  ;;  %v1015_v45 = vadd.f32 %v999_v61, %v963_v16  ;;  %v1187_v1 = vadd.f32 %v1726_v8, %v2358_v3 }
 0x263   : > { %v1170_v13 = vmul.f32 %v2376_v41, %v1150_v22 }
 0x264   : > { %v1134_v59 = vadd.f32 %v1118_v32, %v1082_v38  ;;  %v1067_v43 = vadd.f32 %v1051_v26, %v1015_v45 }
 0x266   : > { %v1186_v29 = vadd.f32 %v1170_v13, %v1134_v59  ;;  %v1119_v30 = vadd.f32 %v1103_v20, %v1067_v43 }
 0x268   : > { %v1218_v9 = vadd.f32 %v1202_v21, %v1186_v29  ;;  %v1171_v4 = vadd.f32 %v1155_v63, %v1119_v30 }
 0x26a   : > { %1234 = vst [vmem:[%s2454_s10 + $0x78] sm:$0xff] %v1218_v9  ;;  %v1203_v36 = vadd.f32 %v1187_v1, %v1171_v4 }
 0x26c   : > { %1219 = vst [vmem:[%s2454_s10] sm:$0xff] %v1203_v36 }
 0x26d   : > { %1876 = shalt.err (!%p1873_p9)
}
 0x26e   : > { %s1877_s26 = scalar_lea.hbm %s2581_s14, 2048  ;;  %s1881_s5 = scalar_lea.hbm %s2687_s19, 4096 }
 0x26f   : > { %p1878_p6 = scmp.ne.s32.totalorder %s2581_s14, %s1877_s26  ;;  %p1882_p7 = scmp.lt.s32.totalorder %s2581_s14, %s2687_s19 }
 0x270   : > { %p1883_p8 = scmp.lt.s32.totalorder %s1881_s5, %s1877_s26 }
 0x271   : > { %p1879_p3 = pnand %p1878_p6, %p2688_p10 }
 0x272   : > { %p1884_p2 = por %p1883_p8, %p1882_p7 }
 0x273   : > { %p1880_p0 = pneg %p1879_p3 }
 0x275   : > { %p1885_p4 = pnand %p1884_p2, %p1880_p0 }
 0x277   : > { %1888 = shalt.err (!%p1885_p4)
}
 0x278   : > { %s1965_s13 = smov 128   ;;  %s1966_s16 = smov 8  }
 0x279   : > { %1623 = dma.vmem_to_hbm [thread:$0]  (%p2688_p10), %s2583_s21, 2048, %s2581_s14, %s1236_s1, %s1965_s13, %s1965_s13, %s1966_s16  }
 0x27a PF: > { %s2689_s30 = sld [smem:[#allocation17_spill]] }
 0x27b   : > { %s2690_s9 = sld [smem:[#allocation21_spill]] }
 0x27c   : > { %s2691_s20 = sld [smem:[#allocation20_spill]] }
 0x280   : > { %s1266_s3 = sand.u32 1, %s2689_s30  }
 0x281   : > { %p2692_p13 = scmp.ne.s32.totalorder %s2690_s9, 0  ;;  %s1267_s10 = scalar_lea.sflag [#allocation5], %s1266_s3 }
 0x282   : > { %p2693_p5 = scmp.ge.s32.totalorder %s2691_s20, 2 }
 0x284   : > { %p1643_p11 = pnand %p2693_p5, %p2692_p13 }
 0x286   : > { %p1644_p1 = pneg %p1643_p11 }
 0x288   : > { %1926 = dma.done.wait (%p1644_p1), %s1267_s10, 2048  }
 0x289   : > { %1928 = vsyncadd (%p1644_p1), %s1267_s10, 4294965248  ;;  %s27_s29 = sadd.s32 1, %s2691_s20   ;;  %s2694_s15 = sld [smem:[#allocation18_spill]] }
 0x28a   : > { %p24_p12 = scmp.ge.s32.totalorder %s27_s29, 4   ;;  %s2695_s26 = sld [smem:[#allocation23_spill]] }
 0x28b   : > { %s2696_s27 = sld [smem:[#allocation19_spill]]  ;;  %s2698_s24 = smov %s1935_s25 }
 0x28c   : > { %s2697_s28 = sld [smem:[#allocation22_spill]]  ;;  %26 = sbr.rel (!%p24_p12) target bundleno = 14 (0xe), region = 125 }
 0x28f   : > { %s2699_s25 = smov %s2694_s15 }
 0x291   :  { %1272 = vsyncpa [#allocation4], 1 }
 0x292   :  { %1274 = vsyncpa [#allocation4 + $0x1], 1 }
 0x293   :  { %1275 = vsyncpa [#allocation7], 1 }
 0x294   :  { %1277 = vsyncpa [#allocation7 + $0x1], 1 }
 0x295   :  { %1278 = vsyncpa [#allocation10], 1 }
 0x296   :  { %1279 = vsyncpa [#allocation5], 1 }
 0x297   :  { %1281 = vsyncpa [#allocation5 + $0x1], 1 }

</bundles_post_ra>
